<compile_context>
chip_gen: v6e
topology: v6e:2x2x1
jax: 0.10.0
libtpu: 0.0.40
codegen_flags: <defaults>
</compile_context>

<pallas_src>
import functools

import jax
import jax.numpy as jnp
from jax.experimental import pallas as pl
from jax.experimental.pallas import tpu as pltpu


_OUT_PAD = 128  # lane-dense packed output width: [logits | value | zero pad]


def _ppo_heads_kernel(feat_ref, w1_ref, b1_ref, w2p_ref, vw2_ref, b2_ref, out_ref,
                      *, hidden_dim, action_dim):
    """Fused policy + value heads on one batch tile.

    feat: [TB, 512]  f32 (cast to MXU dtype in-kernel)
    w1:   [512, 2H]  (policy W1 | value W1), MXU dtype
    b1:   [1, 2H]    f32
    w2p:  [H, 128]   policy W2 in cols [:A], zeros elsewhere, MXU dtype
    vw2:  [1, H]     value W2 row, f32
    b2:   [1, 128]   f32 (policy bias in cols [:A], value bias in col A)
    out:  [TB, 128]  f32, lane-dense packed (logits | value | zeros)
    """
    feat = feat_ref[...].astype(w1_ref.dtype)                       # in-kernel cast
    h = jnp.dot(feat, w1_ref[...], preferred_element_type=jnp.float32)   # [TB, 2H]
    h = jnp.maximum(h + b1_ref[...], 0.0)                           # bias + ReLU, f32

    h_pol = h[:, :hidden_dim].astype(w2p_ref.dtype)                 # [TB, H]
    h_val = h[:, hidden_dim:]                                       # [TB, H] f32

    logits = jnp.dot(h_pol, w2p_ref[...],
                     preferred_element_type=jnp.float32)            # [TB, 128] (MXU)
    value = jnp.sum(h_val * vw2_ref[...], axis=-1, keepdims=True)   # [TB, 1] (VPU+XLU)

    col = jax.lax.broadcasted_iota(jnp.int32, (1, out_ref.shape[-1]), 1)
    out_ref[...] = logits + b2_ref[...] + jnp.where(col == action_dim, value, 0.0)


@functools.partial(jax.jit, static_argnames=("action_dim", "block_b"))
def ppo_heads(feat, packed_params, *, action_dim, block_b=512):
    """Runs the fused policy/value heads Pallas kernel.

    feat: [B, 512] float32
    returns (logits [B, A], value [B], feat [B, 512])
    """
    w1, b1, w2p, vw2, b2 = packed_params
    B, F = feat.shape
    H2 = w1.shape[1]
    H = H2 // 2
    OUT = w2p.shape[1]

    # Batch tile: multiple of 16 (bf16 sublane packing); sized from B so the grid has
    # >= 2 "parallel" steps whenever possible (v7x megacore), capped at block_b.
    if B <= 16:
        tb = B                                   # single block equal to full batch dim
    else:
        tb = min(block_b, pl.cdiv(B, 2))
        tb = max(16, ((tb + 15) // 16) * 16)

    grid = (pl.cdiv(B, tb),)                     # ragged last block handled by Pallas

    kernel = functools.partial(_ppo_heads_kernel,
                               hidden_dim=H, action_dim=action_dim)

    out = pl.pallas_call(
        kernel,
        out_shape=jax.ShapeDtypeStruct((B, OUT), jnp.float32),
        grid=grid,
        in_specs=[
            pl.BlockSpec((tb, F), lambda i: (i, 0)),     # feat tile advances with grid
            pl.BlockSpec((F, H2), lambda i: (0, 0)),     # weights: constant block index,
            pl.BlockSpec((1, H2), lambda i: (0, 0)),     #   fetched once, VMEM-resident
            pl.BlockSpec((H, OUT), lambda i: (0, 0)),
            pl.BlockSpec((1, H), lambda i: (0, 0)),
            pl.BlockSpec((1, OUT), lambda i: (0, 0)),
        ],
        out_specs=pl.BlockSpec((tb, OUT), lambda i: (i, 0)),
        compiler_params=pltpu.CompilerParams(
            dimension_semantics=("parallel",)),
    )(feat, w1, b1, w2p, vw2, b2)

    logits = out[:, :action_dim]
    value = out[:, action_dim]                   # squeeze(-1) of the PyTorch value head
    return logits, value, feat


def ppo_agent_forward(obs, packed_params, *, action_dim, block_b=512):
    """Mirrors PPOAgent.forward semantics for the feature path."""
    if obs.ndim >= 4 and obs.shape[-3] == 3:
        # TODO(synk): ViT encoder (self.vit.vit) is an externally supplied module and
        # is not defined in this file; only the feature-path branch is implemented.
        raise NotImplementedError("ViT image path not implemented")
    return ppo_heads(obs, packed_params, action_dim=action_dim, block_b=block_b)


def init_params(key, feat_dim=512, hidden_dim=256, action_dim=8):
    """Deterministic init matching nn.Linear shapes (stored as [in, out])."""
    ks = jax.random.split(key, 8)

    def lin(kw, kb, fan_in, fan_out):
        bound = 1.0 / jnp.sqrt(float(fan_in))
        w = jax.random.uniform(kw, (fan_in, fan_out), jnp.float32, -bound, bound)
        b = jax.random.uniform(kb, (1, fan_out), jnp.float32, -bound, bound)
        return w, b

    pw1, pb1 = lin(ks[0], ks[1], feat_dim, hidden_dim)
    pw2, pb2 = lin(ks[2], ks[3], hidden_dim, action_dim)
    vw1, vb1 = lin(ks[4], ks[5], feat_dim, hidden_dim)
    vw2, vb2 = lin(ks[6], ks[7], hidden_dim, 1)
    return (pw1, pb1, pw2, pb2, vw1, vb1, vw2, vb2)


def pack_params(params, out_pad=_OUT_PAD, mxu_dtype=jnp.bfloat16):
    """Packs the 8 Linear params into the fused (w1, b1, w2p, vw2_row, b2) layout.

    Matmul weights are stored in the MXU dtype here (once), so the per-call wrapper
    does no weight casting.
    """
    pw1, pb1, pw2, pb2, vw1, vb1, vw2, vb2 = params
    _, H = pw1.shape
    A = pw2.shape[1]
    assert A + 1 <= out_pad, "action_dim + 1 must fit in the 128-lane packed output"

    w1 = jnp.concatenate([pw1, vw1], axis=1).astype(mxu_dtype)        # [512, 2H]
    b1 = jnp.concatenate([pb1, vb1], axis=1).astype(jnp.float32)      # [1, 2H]

    w2p = jnp.zeros((H, out_pad), jnp.float32).at[:, :A].set(pw2)     # [H, 128]
    w2p = w2p.astype(mxu_dtype)
    vw2_row = vw2[:, 0][None, :].astype(jnp.float32)                  # [1, H]

    b2 = jnp.zeros((1, out_pad), jnp.float32)
    b2 = b2.at[0, :A].set(pb2[0]).at[0, A].set(vb2[0, 0])
    return (w1, b1, w2p, vw2_row, b2)


def _reference(feat, params):
    pw1, pb1, pw2, pb2, vw1, vb1, vw2, vb2 = params
    h_p = jnp.maximum(feat @ pw1 + pb1, 0.0)
    logits = h_p @ pw2 + pb2
    h_v = jnp.maximum(feat @ vw1 + vb1, 0.0)
    value = (h_v @ vw2 + vb2)[:, 0]
    return logits, value, feat


if __name__ == "__main__":
    key = jax.random.PRNGKey(0)
    k_feat, k_params = jax.random.split(key)

    B, FEAT, HIDDEN, ACTIONS = 20, 512, 256, 8
    # obs already in 512-d feature form (the non-image branch of forward)
    obs = jax.random.normal(k_feat, (B, FEAT), jnp.float32)
    raw_params = init_params(k_params, FEAT, HIDDEN, ACTIONS)

    ref_logits, ref_value, ref_feat = _reference(obs, raw_params)

    # 1) f32 MXU path with a small tile cap (exercises the ragged last block on a
    #    2-step grid), tight tolerance against the pure-JAX reference.
    packed_f32 = pack_params(raw_params, mxu_dtype=jnp.float32)
    logits32, value32, feat32 = ppo_agent_forward(
        obs, packed_f32, action_dim=ACTIONS, block_b=16)
    jax.block_until_ready((logits32, value32, feat32))
    assert logits32.shape == (B, ACTIONS)
    assert value32.shape == (B,)
    assert feat32.shape == (B, FEAT)
    assert jnp.allclose(logits32, ref_logits, atol=1e-4, rtol=1e-4)
    assert jnp.allclose(value32, ref_value, atol=1e-4, rtol=1e-4)
    assert jnp.allclose(feat32, ref_feat)

    # 2) bf16 MXU path (the optimized default), looser tolerance.
    packed_bf16 = pack_params(raw_params, mxu_dtype=jnp.bfloat16)
    logits16, value16, _ = ppo_agent_forward(obs, packed_bf16, action_dim=ACTIONS)
    jax.block_until_ready((logits16, value16))
    assert jnp.allclose(logits16, ref_logits, atol=3e-2, rtol=3e-2)
    assert jnp.allclose(value16, ref_value, atol=3e-2, rtol=3e-2)

    # 3) Tiny batch: single full-batch block (B <= 16 path).
    logits_s, value_s, _ = ppo_agent_forward(obs[:4], packed_f32, action_dim=ACTIONS)
    jax.block_until_ready((logits_s, value_s))
    assert jnp.allclose(logits_s, ref_logits[:4], atol=1e-4, rtol=1e-4)
    assert jnp.allclose(value_s, ref_value[:4], atol=1e-4, rtol=1e-4)

    print("KERNEL_OK")
</pallas_src>

<mosaic_0001>
module attributes {stable_mosaic.version = 11 : i64} {
  func.func @_ppo_heads_kernel(%arg0: i32, %arg1: memref<16x512xf32, #tpu.memory_space<vmem>>, %arg2: memref<512x512xf32, #tpu.memory_space<vmem>>, %arg3: memref<1x512xf32, #tpu.memory_space<vmem>>, %arg4: memref<256x128xf32, #tpu.memory_space<vmem>>, %arg5: memref<1x256xf32, #tpu.memory_space<vmem>>, %arg6: memref<1x128xf32, #tpu.memory_space<vmem>>, %arg7: memref<16x128xf32, #tpu.memory_space<vmem>>) attributes {dimension_semantics = [#tpu.dimension_semantics<parallel>], iteration_bounds = array<i64: 2>, scalar_prefetch = 0 : i64, scratch_operands = 0 : i64, tpu.core_type = #tpu.core_type<tc>, window_params = [{transform_indices = @transform_0, window_bounds = array<i64: 16, 512>}, {pipeline_mode = #tpu.pipeline_mode<synchronous>, transform_indices = @transform_1, window_bounds = array<i64: 512, 512>}, {pipeline_mode = #tpu.pipeline_mode<synchronous>, transform_indices = @transform_2, window_bounds = array<i64: 1, 512>}, {pipeline_mode = #tpu.pipeline_mode<synchronous>, transform_indices = @transform_3, window_bounds = array<i64: 256, 128>}, {pipeline_mode = #tpu.pipeline_mode<synchronous>, transform_indices = @transform_4, window_bounds = array<i64: 1, 256>}, {pipeline_mode = #tpu.pipeline_mode<synchronous>, transform_indices = @transform_5, window_bounds = array<i64: 1, 128>}, {transform_indices = @transform_6, window_bounds = array<i64: 16, 128>}]} {
    %c0 = arith.constant 0 : index
    %c0_0 = arith.constant 0 : index
    %0 = vector.load %arg1[%c0, %c0_0] : memref<16x512xf32, #tpu.memory_space<vmem>>, vector<16x512xf32>
    %c0_1 = arith.constant 0 : index
    %c0_2 = arith.constant 0 : index
    %1 = vector.load %arg2[%c0_1, %c0_2] : memref<512x512xf32, #tpu.memory_space<vmem>>, vector<512x512xf32>
    %cst = arith.constant dense<0.000000e+00> : vector<16x512xf32>
    %2 = tpu.matmul %0, %1, %cst {dimension_numbers = #tpu.dot_dimension_numbers<[1], [0], [0], [1], [0, 0, 1, 1], [], []>} : vector<16x512xf32>, vector<512x512xf32>, vector<16x512xf32> -> vector<16x512xf32>
    %c0_3 = arith.constant 0 : index
    %c0_4 = arith.constant 0 : index
    %3 = vector.load %arg3[%c0_3, %c0_4] : memref<1x512xf32, #tpu.memory_space<vmem>>, vector<1x512xf32>
    %4 = vector.broadcast %3 : vector<1x512xf32> to vector<16x512xf32>
    %5 = arith.addf %2, %4 : vector<16x512xf32>
    %cst_5 = arith.constant 0.000000e+00 : f32
    %6 = vector.broadcast %cst_5 : f32 to vector<16x512xf32>
    %7 = arith.maximumf %5, %6 : vector<16x512xf32>
    %8 = vector.extract_strided_slice %7 {offsets = [0, 0], sizes = [16, 256], strides = [1, 1]} : vector<16x512xf32> to vector<16x256xf32>
    %9 = vector.extract_strided_slice %7 {offsets = [0, 256], sizes = [16, 256], strides = [1, 1]} : vector<16x512xf32> to vector<16x256xf32>
    %c0_6 = arith.constant 0 : index
    %c0_7 = arith.constant 0 : index
    %10 = vector.load %arg4[%c0_6, %c0_7] : memref<256x128xf32, #tpu.memory_space<vmem>>, vector<256x128xf32>
    %cst_8 = arith.constant dense<0.000000e+00> : vector<16x128xf32>
    %11 = tpu.matmul %8, %10, %cst_8 {dimension_numbers = #tpu.dot_dimension_numbers<[1], [0], [0], [1], [0, 0, 1, 1], [], []>} : vector<16x256xf32>, vector<256x128xf32>, vector<16x128xf32> -> vector<16x128xf32>
    %c0_9 = arith.constant 0 : index
    %c0_10 = arith.constant 0 : index
    %12 = vector.load %arg5[%c0_9, %c0_10] : memref<1x256xf32, #tpu.memory_space<vmem>>, vector<1x256xf32>
    %13 = vector.broadcast %12 : vector<1x256xf32> to vector<16x256xf32>
    %14 = arith.mulf %9, %13 : vector<16x256xf32>
    %cst_11 = arith.constant dense<0.000000e+00> : vector<16xf32>
    %15 = vector.multi_reduction <add>, %14, %cst_11 [1] : vector<16x256xf32> to vector<16xf32>
    %16 = vector.shape_cast %15 : vector<16xf32> to vector<16x1xf32>
    %17 = tpu.iota {dimensions = array<i32: 1>} : vector<1x128xi32>
    %c0_12 = arith.constant 0 : index
    %c0_13 = arith.constant 0 : index
    %18 = vector.load %arg6[%c0_12, %c0_13] : memref<1x128xf32, #tpu.memory_space<vmem>>, vector<1x128xf32>
    %19 = vector.broadcast %18 : vector<1x128xf32> to vector<16x128xf32>
    %20 = arith.addf %11, %19 : vector<16x128xf32>
    %c8_i32 = arith.constant 8 : i32
    %21 = vector.broadcast %c8_i32 : i32 to vector<1x128xi32>
    %22 = arith.cmpi eq, %17, %21 : vector<1x128xi32>
    %cst_14 = arith.constant 0.000000e+00 : f32
    %23 = vector.shape_cast %22 : vector<1x128xi1> to vector<1x128xi1>
    %24 = vector.broadcast %23 : vector<1x128xi1> to vector<16x128xi1>
    %25 = vector.shape_cast %16 : vector<16x1xf32> to vector<16x1xf32>
    %26 = vector.broadcast %25 : vector<16x1xf32> to vector<16x128xf32>
    %27 = vector.broadcast %cst_14 : f32 to vector<16x128xf32>
    %28 = arith.select %24, %26, %27 : vector<16x128xi1>, vector<16x128xf32>
    %29 = arith.addf %20, %28 : vector<16x128xf32>
    %c0_15 = arith.constant 0 : index
    %c0_16 = arith.constant 0 : index
    %30 = vector.load %arg7[%c0_15, %c0_16] : memref<16x128xf32, #tpu.memory_space<vmem>>, vector<16x128xf32>
    tpu.vector_store %arg7[%c0_15, %c0_16], %29 {strides = array<i32>} : memref<16x128xf32, #tpu.memory_space<vmem>>, vector<16x128xf32>,
    return
  }
  func.func @transform_0(%arg0: i32) -> (i32, i32) {
    %c0_i32 = arith.constant 0 : i32
    %c0_i32_0 = arith.constant 0 : i32
    return %arg0, %c0_i32 : i32, i32
  }
  func.func @transform_1(%arg0: i32) -> (i32, i32) {
    %c0_i32 = arith.constant 0 : i32
    %c0_i32_0 = arith.constant 0 : i32
    %c0_i32_1 = arith.constant 0 : i32
    return %c0_i32, %c0_i32_0 : i32, i32
  }
  func.func @transform_2(%arg0: i32) -> (i32, i32) {
    %c0_i32 = arith.constant 0 : i32
    %c0_i32_0 = arith.constant 0 : i32
    %c0_i32_1 = arith.constant 0 : i32
    return %c0_i32, %c0_i32_0 : i32, i32
  }
  func.func @transform_3(%arg0: i32) -> (i32, i32) {
    %c0_i32 = arith.constant 0 : i32
    %c0_i32_0 = arith.constant 0 : i32
    %c0_i32_1 = arith.constant 0 : i32
    return %c0_i32, %c0_i32_0 : i32, i32
  }
  func.func @transform_4(%arg0: i32) -> (i32, i32) {
    %c0_i32 = arith.constant 0 : i32
    %c0_i32_0 = arith.constant 0 : i32
    %c0_i32_1 = arith.constant 0 : i32
    return %c0_i32, %c0_i32_0 : i32, i32
  }
  func.func @transform_5(%arg0: i32) -> (i32, i32) {
    %c0_i32 = arith.constant 0 : i32
    %c0_i32_0 = arith.constant 0 : i32
    %c0_i32_1 = arith.constant 0 : i32
    return %c0_i32, %c0_i32_0 : i32, i32
  }
  func.func @transform_6(%arg0: i32) -> (i32, i32) {
    %c0_i32 = arith.constant 0 : i32
    %c0_i32_0 = arith.constant 0 : i32
    return %arg0, %c0_i32 : i32, i32
  }
}

</mosaic_0001>

<bundles_post_ra>
// kernel: ppo_heads.1
= control target key start
LH: loop header
LB: loop body
LE: loop exit
PB: predicated region body
PF: predicated region fallthrough
CT: control target
= control target key end

     0   :  { %11 = vsyncpa [#allocation3], 0  ;;  %s2094_s0 = inlined_call_operand.hbm [shape: f32[20,512], index: 0, kind: input, shape index: {}]   ;;  %s2095_s1 = inlined_call_operand.hbm [shape: f32[512,512], index: 1, kind: input, shape index: {}]   ;;  %s2096_s2 = inlined_call_operand.hbm [shape: f32[1,512], index: 2, kind: input, shape index: {}]   ;;  %s2097_s3 = inlined_call_operand.hbm [shape: f32[256,128], index: 3, kind: input, shape index: {}]   ;;  %s2098_s4 = inlined_call_operand.vmem [shape: f32[1,256], index: 4, kind: input, shape index: {}]   ;;  %s2099_s5 = inlined_call_operand.vmem [shape: f32[1,128], index: 5, kind: input, shape index: {}]   ;;  %s2100_s6 = inlined_call_operand.vmem [shape: f32[20,128], index: 6, kind: output, shape index: {}]  }
   0x1   :  { %13 = vsyncpa [#allocation3 + $0x1], 0 }
   0x2   :  { %14 = vsyncpa [#allocation5], 0 }
   0x3   :  { %15 = vsyncpa [#allocation8], 0  ;;  %s1842_s21 = smov 0   ;;  %s1844_s22 = smov 0  }
   0x4   :  { %s1846_s23 = smov 0   ;;  %s1848_s24 = smov 0  }
   0x5 LB: > { %s1861_s25 = sadd.s32 4294967295, %s1763_s24   ;;  %s1864_s26 = sadd.s32 1, %s1763_s24   ;;  %s1763_s24 = sphi %s1848_s24, %s2119_s24   ;;  %s1759_s23 = sphi %s1846_s23, %s2118_s23   ;;  %s1755_s22 = sphi %s1844_s22, %s2117_s22   ;;  %s1751_s21 = sphi %s1842_s21, %s2116_s21  }
   0x6   : > { %s25_s27 = ssub.s32 %s1763_s24, %s1864_s26  ;;  %s28_s28 = sadd.s32 1, %s1759_s23 }
   0x7   : > { %p26_p0 = scmp.eq.s32.totalorder %s25_s27, 0  ;;  %p35_p1 = scmp.ne.s32.totalorder %s1759_s23, %s1755_s22 }
   0x8   : > { %p36_p2 = scmp.eq.s32.totalorder %s1763_s24, 0  ;;  %p41_p3 = scmp.ne.s32.totalorder %s1755_s22, %s1751_s21 }
   0x9   : > { %s1874_s29 = scalar_select %p26_p0, %s1759_s23, %s28_s28  }
   0xa   : > { %p1876_p4 = por %p36_p2, %p35_p1  ;;  %p2101_p5 = scmp.eq.s32.totalorder %s1861_s25, 0 }
   0xb   : > { %p170_p6 = scmp.eq.s32.totalorder %s1861_s25, 1  ;;  %p1337_p7 = scmp.ge.s32.totalorder %s1763_s24, 1 }
   0xc   : > { %p1885_p8 = por %p2101_p5, %p41_p3  ;;  %p183_p9 = scmp.lt.s32.totalorder %s1763_s24, 3 }
   0xd   : > { %p1890_p10 = por %p170_p6, %p35_p1  ;;  %s1797_s10 = smov [#allocation4]  }
   0xe   : > { %s2105_s7 = scalar_select %p1885_p8, 1, 0 }
   0xf   : > { %s2106_s8 = scalar_select %p1890_p10, 1, 0 }
  0x10   : > { %p1894_p11 = pnand %p1337_p7, %p183_p9  ;;  %s195_s11 = sshll.u32 %s1797_s10, 4  ;;  %s196_s11 = int_to_ptr.vmem [resolvable:$true] %s195_s11 }
  0x11   : > { %s1798_s13 = smov [#allocation6]   ;;  %s1799_s15 = smov [#allocation7]  }
  0x12   : > { %s2107_s9 = scalar_select %p1894_p11, 1, 0 }
  0x13   : > { %p1464_p12 = pneg %p1894_p11  ;;  %s209_s14 = sshll.u32 %s1798_s13, 4  ;;  %s210_s14 = int_to_ptr.vmem [resolvable:$true] %s209_s14 }
  0x14   : > { %s219_s16 = sshll.u32 %s1799_s15, 4  ;;  %s1596_s17 = scalar_lea.vmem %s196_s11, 32768  ;;  %s220_s16 = int_to_ptr.vmem [resolvable:$true] %s219_s16 }
  0x15   : > { %p1902_p13 = pnand %p1464_p12, %p2101_p5  ;;  %p1597_p1 = scmp.ne.s32.totalorder %s196_s11, %s1596_s17 }
  0x16   : > { %p1604_p6 = scmp.lt.s32.totalorder %s196_s11, %s196_s11  ;;  %p1605_p7 = scmp.lt.s32.totalorder %s1596_s17, %s1596_s17 }
  0x17   : > { %p1587_p0 = pneg %p1902_p13 }
  0x18   : > { %p1606_p9 = por %p1605_p7, %p1604_p6 }
  0x19   : > { %p1599_p2 = pnand %p1597_p1, %p1587_p0 }
  0x1b   : > { %p1600_p3 = pneg %p1599_p2 }
  0x1d   : > { %p1607_p12 = pnand %p1606_p9, %p1600_p3 }
  0x1f   : > { %1610 = shalt.err (!%p1607_p12)
}
  0x20   : > { %s1800_s18 = smov 512   ;;  %s1801_s19 = smov 32  }
  0x21   : > { %1467 = dma.hbm_to_vmem [thread:$0]  (!%p1902_p13), %s2095_s1, 32768, %s196_s11, [#allocation5], %s1800_s18, %s1800_s18, %s1801_s19  }
  0x22   : > { %s1622_s27 = scalar_lea.vmem %s210_s14, 64  ;;  %p1630_p10 = scmp.lt.s32.totalorder %s210_s14, %s210_s14 }
  0x23   : > { %p1623_p5 = scmp.ne.s32.totalorder %s210_s14, %s1622_s27  ;;  %p1631_p8 = scmp.lt.s32.totalorder %s1622_s27, %s1622_s27 }
  0x25   : > { %p1625_p1 = pnand %p1623_p5, %p1587_p0  ;;  %p1632_p6 = por %p1631_p8, %p1630_p10 }
  0x27   : > { %p1626_p2 = pneg %p1625_p1 }
  0x29   : > { %p1633_p3 = pnand %p1632_p6, %p1626_p2 }
  0x2b   : > { %1636 = shalt.err (!%p1633_p3)
}
  0x2c   : > { %1470 = dma.hbm_to_vmem [thread:$0]  (!%p1902_p13), %s2096_s2, 64, %s210_s14, [#allocation5]  }
  0x2d   : > { %s1648_s11 = scalar_lea.vmem %s220_s16, 4096  ;;  %p1656_p12 = scmp.lt.s32.totalorder %s220_s16, %s220_s16 }
  0x2e   : > { %p1649_p7 = scmp.ne.s32.totalorder %s220_s16, %s1648_s11  ;;  %p1657_p1 = scmp.lt.s32.totalorder %s1648_s11, %s1648_s11 }
  0x30   : > { %p1651_p9 = pnand %p1649_p7, %p1587_p0  ;;  %p1658_p11 = por %p1657_p1, %p1656_p12 }
  0x32   : > { %p1652_p5 = pneg %p1651_p9 }
  0x34   : > { %p1659_p8 = pnand %p1658_p11, %p1652_p5 }
  0x36   : > { %1662 = shalt.err (!%p1659_p8)
}
  0x37   : > { %s1802_s13 = smov 128   ;;  %s1803_s15 = smov 8  }
  0x38   : > { %1473 = dma.hbm_to_vmem [thread:$0]  (!%p1902_p13), %s2097_s3, 4096, %s220_s16, [#allocation8], %s1802_s13, %s1802_s13, %s1803_s15  }
  0x39   : > { %p1341_p10 = scmp.ge.s32.totalorder %s1763_s24, 2 }
  0x3b   : > { %235 = sbr.rel (%p1341_p10) target bundleno = 96 (0x60), region = 36 }
  0x40   : > { %238 = sbr.rel (!%p1876_p4) target bundleno = 96 (0x60), region = 40  ;;  %s239_s14 = sand.u32 (%p1876_p4), 1, %s1759_s23  }
  0x41   : > { %s1343_s19 = sshll.u32 (%p1876_p4), %s1763_s24, 1  ;;  %s1342_s20 = sshll.u32 (%p1876_p4), %s239_s14, 6 }
  0x42   : > { %s245_s21 = ssub.s32 (%p1876_p4), 3, %s1343_s19  ;;  %s1940_s28 = scalar_lea.sflag (%p1876_p4), [#allocation3], %s239_s14 }
  0x43   : > { %p246_p11 = scmp.lt.s32.totalorder (%p1876_p4), %s245_s21, 2  ;;  %s243_s16 = scalar_lea.vmem (%p1876_p4), [#allocation2], %s1342_s20 }
  0x45   : > { %s2121_s21 = smov (!%p246_p11, %s245_s21), 2 }
  0x46   : > { %s1937_s27 = sshll.u32 %s2121_s21, 9 }
  0x47   : > { %s251_s12 = ssub.s32 1024, %s1937_s27 }
  0x48   : > { %252 = vsyncadd %s1940_s28, %s251_s12  ;;  %p1346_p4 = scmp.ne.s32.totalorder %s1937_s27, 0  ;;  %s1377_s30 = sshll.u32 %s1763_s24, 10 }
  0x49   : > { %s1948_s13 = scalar_lea.hbm %s2094_s0, %s1377_s30  ;;  %s258_s15 = sshll.u32 %s243_s16, 4  ;;  %s1950_s15 = int_to_ptr.vmem [resolvable:$true] %s258_s15 }
  0x4a   : > { %s1663_s17 = scalar_lea.hbm %s1948_s13, %s1937_s27  ;;  %s1667_s24 = scalar_lea.hbm %s2094_s0, 1536 }
  0x4b   : > { %p1664_p13 = scmp.ne.s32.totalorder %s1948_s13, %s1663_s17  ;;  %p1668_p6 = scmp.lt.s32.totalorder %s1948_s13, %s2094_s0 }
  0x4c   : > { %p1669_p3 = scmp.lt.s32.totalorder %s1667_s24, %s1663_s17 }
  0x4d   : > { %p1665_p0 = pnand %p1664_p13, %p1346_p4 }
  0x4e   : > { %p1670_p7 = por %p1669_p3, %p1668_p6 }
  0x4f   : > { %p1666_p2 = pneg %p1665_p0 }
  0x51   : > { %p1671_p9 = pnand %p1670_p7, %p1666_p2 }
  0x53   : > { %1674 = shalt.err (!%p1671_p9)
}
  0x54   : > { %s1675_s21 = scalar_lea.vmem %s1950_s15, %s1937_s27  ;;  %s1804_s12 = smov [#allocation2]  }
  0x55   : > { %p1676_p5 = scmp.ne.s32.totalorder %s1950_s15, %s1675_s21  ;;  %s1679_s16 = sshll.u32 %s1804_s12, 4  ;;  %s1680_s16 = int_to_ptr.vmem [resolvable:$false] %s1679_s16 }
  0x56   : > { %s1681_s30 = scalar_lea.vmem %s1680_s16, 2048  ;;  %p1682_p8 = scmp.lt.s32.totalorder %s1950_s15, %s1680_s16 }
  0x57   : > { %p1677_p12 = pnand %p1676_p5, %p1346_p4  ;;  %p1683_p10 = scmp.lt.s32.totalorder %s1681_s30, %s1675_s21 }
  0x59   : > { %p1678_p1 = pneg %p1677_p12  ;;  %p1684_p11 = por %p1683_p10, %p1682_p8 }
  0x5b   : > { %p1685_p13 = pnand %p1684_p11, %p1678_p1 }
  0x5d   : > { %1688 = shalt.err (!%p1685_p13)
}
  0x5e   : > { %s1805_s10 = smov 512   ;;  %s1806_s11 = smov 32  }
  0x5f   : > { %264 = dma.hbm_to_vmem [thread:$0]  (%p1346_p4), %s1948_s13, %s1937_s27, %s1950_s15, %s1940_s28, %s1805_s10, %s1805_s10, %s1806_s11  }
  0x60 PF: > { %p2109_p0 = scmp.ne.s32.totalorder %s2107_s9, 0 }
  0x61   : > { %s1979_s17 = sand.u32 (!%p2109_p0), 1, %s1755_s22   ;;  %p2110_p2 = scmp.ne.s32.totalorder (!%p2109_p0), %s2105_s7, 0 }
  0x62   : > { %270 = sbr.rel (%p2109_p0) target bundleno = 634 (0x27a), region = 44  ;;  %s1352_s18 = sshll.u32 (!%p2109_p0), %s1979_s17, 6 }
  0x63   : > { %s273_s14 = scalar_lea.sflag (!%p2109_p0), [#allocation3], %s1979_s17  ;;  %s1983_s24 = scalar_lea.vmem (!%p2109_p0), [#allocation2], %s1352_s18 }
  0x67   : > { %1738 = dma.done.wait (%p2110_p2), %s273_s14, 1024  }
  0x68   : > { %1740 = vsyncadd (%p2110_p2), %s273_s14, 4294966272  ;;  %p2111_p4 = scmp.eq.s32.totalorder %s1861_s25, 0 }
  0x6a   : > { %1742 = dma.done.wait (%p2111_p4), [#allocation5], 32832   ;;  %p2112_p6 = pmov %p2111_p4 }
  0x6b   : > { %p2113_p3 = pmov %p2111_p4 }
  0x6c   : > { %1744 = vsyncadd (%p2112_p6), [#allocation5], 4294934464 }
  0x6d   : > { %1746 = dma.done.wait (%p2113_p3), [#allocation8], 4096   ;;  %p2114_p7 = pmov %p2113_p3 }
  0x6e   : > { %v396_v0 = vld [vmem:[#allocation4 + $0x1e8] sm:$0xff]  ;;  %v395_v2 = vld [vmem:[#allocation4 + $0x1e0] sm:$0xff]  ;;  %s1356_s13 = sshll.u32 %s1979_s17, 4  ;;  %p2115_p9 = scmp.ne.s32.totalorder %s2106_s8, 0 }
  0x6f   : > { %1748 = vsyncadd (%p2114_p7), [#allocation8], 4294963200  ;;  %v524_v1 = vld [vmem:[#allocation4 + $0x5e8] sm:$0xff]  ;;  %613 = vmatprep.subr.mxu0 %v396_v0  ;;  %v523_v3 = vld [vmem:[#allocation4 + $0x5e0] sm:$0xff]  ;;  %s2046_s15 = scalar_lea.vmem [#allocation9], %s1356_s13   ;;  %s1359_s19 = sshll.u32 (%p2115_p9), %s1861_s25, 1 }
  0x70   : > { %690 = vmatprep.subr.mxu1 %v524_v1  ;;  %v392_v4 = vld [vmem:[#allocation4 + $0x1c8] sm:$0xff]  ;;  %614 = vmatpush1.msra.mxu0 %v395_v2  ;;  %v391_v6 = vld [vmem:[#allocation4 + $0x1c0] sm:$0xff]  ;;  %s1378_s20 = sshll.u32 (%p2115_p9), %s1861_s25, 4  ;;  %s1084_s21 = ssub.s32 (%p2115_p9), 3, %s1359_s19 }
  0x71   : > { %v520_v5 = vld [vmem:[#allocation4 + $0x5c8] sm:$0xff]  ;;  %691 = vmatpush1.msra.mxu1 %v523_v3  ;;  %v519_v7 = vld [vmem:[#allocation4 + $0x5c0] sm:$0xff]  ;;  %615 = vmatprep.subr.mxu0 %v392_v4  ;;  %s2057_s30 = scalar_lea.vmem (%p2115_p9), %s2100_s6, %s1378_s20   ;;  %p1085_p5 = scmp.lt.s32.totalorder (%p2115_p9), %s1084_s21, 2 }
  0x72   : > { %v388_v8 = vld [vmem:[#allocation4 + $0x1a8] sm:$0xff]  ;;  %692 = vmatprep.subr.mxu1 %v520_v5  ;;  %v387_v10 = vld [vmem:[#allocation4 + $0x1a0] sm:$0xff]  ;;  %616 = vmatpush1.msra.mxu0 %v391_v6 }
  0x73   : > { %v516_v9 = vld [vmem:[#allocation4 + $0x5a8] sm:$0xff]  ;;  %v515_v11 = vld [vmem:[#allocation4 + $0x5a0] sm:$0xff]  ;;  %693 = vmatpush1.msra.mxu1 %v519_v7  ;;  %617 = vmatprep.subr.mxu0 %v388_v8 }
  0x74   : > { %v384_v12 = vld [vmem:[#allocation4 + $0x188] sm:$0xff]  ;;  %694 = vmatprep.subr.mxu1 %v516_v9  ;;  %v383_v14 = vld [vmem:[#allocation4 + $0x180] sm:$0xff]  ;;  %618 = vmatpush1.msra.mxu0 %v387_v10 }
  0x75   : > { %v512_v13 = vld [vmem:[#allocation4 + $0x588] sm:$0xff]  ;;  %v511_v15 = vld [vmem:[#allocation4 + $0x580] sm:$0xff]  ;;  %695 = vmatpush1.msra.mxu1 %v515_v11  ;;  %619 = vmatprep.subr.mxu0 %v384_v12 }
  0x76   : > { %v380_v16 = vld [vmem:[#allocation4 + $0x168] sm:$0xff]  ;;  %696 = vmatprep.subr.mxu1 %v512_v13  ;;  %v379_v18 = vld [vmem:[#allocation4 + $0x160] sm:$0xff]  ;;  %620 = vmatpush1.msra.mxu0 %v383_v14 }
  0x77   : > { %v508_v17 = vld [vmem:[#allocation4 + $0x568] sm:$0xff]  ;;  %v507_v19 = vld [vmem:[#allocation4 + $0x560] sm:$0xff]  ;;  %697 = vmatpush1.msra.mxu1 %v511_v15  ;;  %621 = vmatprep.subr.mxu0 %v380_v16 }
  0x78   : > { %v376_v20 = vld [vmem:[#allocation4 + $0x148] sm:$0xff]  ;;  %698 = vmatprep.subr.mxu1 %v508_v17  ;;  %v375_v22 = vld [vmem:[#allocation4 + $0x140] sm:$0xff]  ;;  %622 = vmatpush1.msra.mxu0 %v379_v18 }
  0x79   : > { %v504_v21 = vld [vmem:[#allocation4 + $0x548] sm:$0xff]  ;;  %v503_v23 = vld [vmem:[#allocation4 + $0x540] sm:$0xff]  ;;  %699 = vmatpush1.msra.mxu1 %v507_v19  ;;  %623 = vmatprep.subr.mxu0 %v376_v20 }
  0x7a   : > { %v372_v24 = vld [vmem:[#allocation4 + $0x128] sm:$0xff]  ;;  %700 = vmatprep.subr.mxu1 %v504_v21  ;;  %v371_v26 = vld [vmem:[#allocation4 + $0x120] sm:$0xff]  ;;  %624 = vmatpush1.msra.mxu0 %v375_v22 }
  0x7b   : > { %v500_v25 = vld [vmem:[#allocation4 + $0x528] sm:$0xff]  ;;  %v499_v27 = vld [vmem:[#allocation4 + $0x520] sm:$0xff]  ;;  %701 = vmatpush1.msra.mxu1 %v503_v23  ;;  %625 = vmatprep.subr.mxu0 %v372_v24 }
  0x7c   : > { %v368_v28 = vld [vmem:[#allocation4 + $0x108] sm:$0xff]  ;;  %702 = vmatprep.subr.mxu1 %v500_v25  ;;  %v367_v30 = vld [vmem:[#allocation4 + $0x100] sm:$0xff]  ;;  %626 = vmatpush1.msra.mxu0 %v371_v26 }
  0x7d   : > { %v496_v29 = vld [vmem:[#allocation4 + $0x508] sm:$0xff]  ;;  %v495_v31 = vld [vmem:[#allocation4 + $0x500] sm:$0xff]  ;;  %703 = vmatpush1.msra.mxu1 %v499_v27  ;;  %627 = vmatprep.subr.mxu0 %v368_v28 }
  0x7e   : > { %v364_v32 = vld [vmem:[#allocation4 + $0xe8] sm:$0xff]  ;;  %704 = vmatprep.subr.mxu1 %v496_v29  ;;  %v363_v34 = vld [vmem:[#allocation4 + $0xe0] sm:$0xff]  ;;  %628 = vmatpush1.msra.mxu0 %v367_v30 }
  0x7f   : > { %v492_v33 = vld [vmem:[#allocation4 + $0x4e8] sm:$0xff]  ;;  %v491_v35 = vld [vmem:[#allocation4 + $0x4e0] sm:$0xff]  ;;  %705 = vmatpush1.msra.mxu1 %v495_v31  ;;  %629 = vmatprep.subr.mxu0 %v364_v32 }
  0x80   : > { %v360_v36 = vld [vmem:[#allocation4 + $0xc8] sm:$0xff]  ;;  %706 = vmatprep.subr.mxu1 %v492_v33  ;;  %v359_v38 = vld [vmem:[#allocation4 + $0xc0] sm:$0xff]  ;;  %630 = vmatpush1.msra.mxu0 %v363_v34 }
  0x81   : > { %v488_v37 = vld [vmem:[#allocation4 + $0x4c8] sm:$0xff]  ;;  %v487_v39 = vld [vmem:[#allocation4 + $0x4c0] sm:$0xff]  ;;  %707 = vmatpush1.msra.mxu1 %v491_v35  ;;  %631 = vmatprep.subr.mxu0 %v360_v36 }
  0x82   : > { %v356_v40 = vld [vmem:[#allocation4 + $0xa8] sm:$0xff]  ;;  %708 = vmatprep.subr.mxu1 %v488_v37  ;;  %v355_v42 = vld [vmem:[#allocation4 + $0xa0] sm:$0xff]  ;;  %632 = vmatpush1.msra.mxu0 %v359_v38 }
  0x83   : > { %v484_v41 = vld [vmem:[#allocation4 + $0x4a8] sm:$0xff]  ;;  %v483_v43 = vld [vmem:[#allocation4 + $0x4a0] sm:$0xff]  ;;  %709 = vmatpush1.msra.mxu1 %v487_v39  ;;  %633 = vmatprep.subr.mxu0 %v356_v40 }
  0x84   : > { %v352_v44 = vld [vmem:[#allocation4 + $0x88] sm:$0xff]  ;;  %710 = vmatprep.subr.mxu1 %v484_v41  ;;  %v351_v46 = vld [vmem:[#allocation4 + $0x80] sm:$0xff]  ;;  %634 = vmatpush1.msra.mxu0 %v355_v42 }
  0x85   : > { %v480_v45 = vld [vmem:[#allocation4 + $0x488] sm:$0xff]  ;;  %v479_v47 = vld [vmem:[#allocation4 + $0x480] sm:$0xff]  ;;  %711 = vmatpush1.msra.mxu1 %v483_v43  ;;  %635 = vmatprep.subr.mxu0 %v352_v44 }
  0x86   : > { %v348_v48 = vld [vmem:[#allocation4 + $0x68] sm:$0xff]  ;;  %712 = vmatprep.subr.mxu1 %v480_v45  ;;  %v347_v50 = vld [vmem:[#allocation4 + $0x60] sm:$0xff]  ;;  %636 = vmatpush1.msra.mxu0 %v351_v46 }
  0x87   : > { %v476_v49 = vld [vmem:[#allocation4 + $0x468] sm:$0xff]  ;;  %v475_v51 = vld [vmem:[#allocation4 + $0x460] sm:$0xff]  ;;  %713 = vmatpush1.msra.mxu1 %v479_v47  ;;  %637 = vmatprep.subr.mxu0 %v348_v48 }
  0x88   : > { %v344_v52 = vld [vmem:[#allocation4 + $0x48] sm:$0xff]  ;;  %714 = vmatprep.subr.mxu1 %v476_v49  ;;  %v343_v54 = vld [vmem:[#allocation4 + $0x40] sm:$0xff]  ;;  %638 = vmatpush1.msra.mxu0 %v347_v50 }
  0x89   : > { %v472_v53 = vld [vmem:[#allocation4 + $0x448] sm:$0xff]  ;;  %v471_v55 = vld [vmem:[#allocation4 + $0x440] sm:$0xff]  ;;  %715 = vmatpush1.msra.mxu1 %v475_v51  ;;  %639 = vmatprep.subr.mxu0 %v344_v52 }
  0x8a   : > { %v340_v56 = vld [vmem:[#allocation4 + $0x28] sm:$0xff]  ;;  %716 = vmatprep.subr.mxu1 %v472_v53  ;;  %v339_v58 = vld [vmem:[#allocation4 + $0x20] sm:$0xff]  ;;  %640 = vmatpush1.msra.mxu0 %v343_v54 }
  0x8b   : > { %v468_v57 = vld [vmem:[#allocation4 + $0x428] sm:$0xff]  ;;  %v467_v59 = vld [vmem:[#allocation4 + $0x420] sm:$0xff]  ;;  %717 = vmatpush1.msra.mxu1 %v471_v55  ;;  %641 = vmatprep.subr.mxu0 %v340_v56 }
  0x8c   : > { %v336_v60 = vld [vmem:[#allocation4 + $0x8] sm:$0xff]  ;;  %718 = vmatprep.subr.mxu1 %v468_v57  ;;  %v335_v62 = vld [vmem:[#allocation4] sm:$0xff]  ;;  %642 = vmatpush1.msra.mxu0 %v339_v58 }
  0x8d   : > { %v464_v61 = vld [vmem:[#allocation4 + $0x408] sm:$0xff]  ;;  %v463_v63 = vld [vmem:[#allocation4 + $0x400] sm:$0xff]  ;;  %719 = vmatpush1.msra.mxu1 %v467_v59  ;;  %643 = vmatprep.subr.mxu0 %v336_v60 }
  0x8e   : > { %v460_v0 = vld [vmem:[#allocation4 + $0x3e8] sm:$0xff]  ;;  %720 = vmatprep.subr.mxu1 %v464_v61  ;;  %v459_v2 = vld [vmem:[#allocation4 + $0x3e0] sm:$0xff]  ;;  %644 = vmatpush1.msra.mxu0 %v335_v62 }
  0x8f   : > { %v588_v1 = vld [vmem:[#allocation4 + $0x7e8] sm:$0xff]  ;;  %v587_v3 = vld [vmem:[#allocation4 + $0x7e0] sm:$0xff]  ;;  %721 = vmatpush1.msra.mxu1 %v463_v63  ;;  %645 = vmatprep.subr.mxu0 %v460_v0 }
  0x90   : > { %v456_v4 = vld [vmem:[#allocation4 + $0x3c8] sm:$0xff]  ;;  %722 = vmatprep.subr.mxu1 %v588_v1  ;;  %v455_v6 = vld [vmem:[#allocation4 + $0x3c0] sm:$0xff]  ;;  %646 = vmatpush2.msra.mxu0 %v459_v2  ;;  %v2004_v2 = vld [vmem:[%s1983_s24 + $0x18] sm:$0xff] }
  0x91   : > { %v584_v5 = vld [vmem:[#allocation4 + $0x7c8] sm:$0xff]  ;;  %v583_v7 = vld [vmem:[#allocation4 + $0x7c0] sm:$0xff]  ;;  %723 = vmatpush2.msra.mxu1 %v587_v3  ;;  %647 = vmatprep.subr.mxu0 %v456_v4  ;;  %v398_v3 = vld [vmem:[#allocation4 + $0x1f8] sm:$0xff] }
  0x92   : > { %v452_v8 = vld [vmem:[#allocation4 + $0x3a8] sm:$0xff]  ;;  %724 = vmatprep.subr.mxu1 %v584_v5  ;;  %v451_v10 = vld [vmem:[#allocation4 + $0x3a0] sm:$0xff]  ;;  %648 = vmatpush2.msra.mxu0 %v455_v6  ;;  %v526_v4 = vld [vmem:[#allocation4 + $0x5f8] sm:$0xff] }
  0x93   : > { %v580_v9 = vld [vmem:[#allocation4 + $0x7a8] sm:$0xff]  ;;  %v579_v11 = vld [vmem:[#allocation4 + $0x7a0] sm:$0xff]  ;;  %725 = vmatpush2.msra.mxu1 %v583_v7  ;;  %649 = vmatprep.subr.mxu0 %v452_v8  ;;  %v2008_v5 = vld [vmem:[%s1983_s24 + $0x10] sm:$0xff] }
  0x94   : > { %v448_v12 = vld [vmem:[#allocation4 + $0x388] sm:$0xff]  ;;  %726 = vmatprep.subr.mxu1 %v580_v9  ;;  %v447_v14 = vld [vmem:[#allocation4 + $0x380] sm:$0xff]  ;;  %650 = vmatpush2.msra.mxu0 %v451_v10  ;;  %v397_v6 = vld [vmem:[#allocation4 + $0x1f0] sm:$0xff] }
  0x95   : > { %v576_v13 = vld [vmem:[#allocation4 + $0x788] sm:$0xff]  ;;  %v575_v15 = vld [vmem:[#allocation4 + $0x780] sm:$0xff]  ;;  %727 = vmatpush2.msra.mxu1 %v579_v11  ;;  %651 = vmatprep.subr.mxu0 %v448_v12  ;;  %v525_v7 = vld [vmem:[#allocation4 + $0x5f0] sm:$0xff] }
  0x96   : > { %v444_v16 = vld [vmem:[#allocation4 + $0x368] sm:$0xff]  ;;  %728 = vmatprep.subr.mxu1 %v576_v13  ;;  %v443_v18 = vld [vmem:[#allocation4 + $0x360] sm:$0xff]  ;;  %652 = vmatpush2.msra.mxu0 %v447_v14  ;;  %v394_v8 = vld [vmem:[#allocation4 + $0x1d8] sm:$0xff] }
  0x97   : > { %v572_v17 = vld [vmem:[#allocation4 + $0x768] sm:$0xff]  ;;  %v571_v19 = vld [vmem:[#allocation4 + $0x760] sm:$0xff]  ;;  %729 = vmatpush2.msra.mxu1 %v575_v15  ;;  %653 = vmatprep.subr.mxu0 %v444_v16  ;;  %v522_v9 = vld [vmem:[#allocation4 + $0x5d8] sm:$0xff] }
  0x98   : > { %v440_v20 = vld [vmem:[#allocation4 + $0x348] sm:$0xff]  ;;  %730 = vmatprep.subr.mxu1 %v572_v17  ;;  %v439_v22 = vld [vmem:[#allocation4 + $0x340] sm:$0xff]  ;;  %654 = vmatpush2.msra.mxu0 %v443_v18  ;;  %v393_v10 = vld [vmem:[#allocation4 + $0x1d0] sm:$0xff] }
  0x99   : > { %v568_v21 = vld [vmem:[#allocation4 + $0x748] sm:$0xff]  ;;  %v567_v23 = vld [vmem:[#allocation4 + $0x740] sm:$0xff]  ;;  %731 = vmatpush2.msra.mxu1 %v571_v19  ;;  %655 = vmatprep.subr.mxu0 %v440_v20  ;;  %v521_v11 = vld [vmem:[#allocation4 + $0x5d0] sm:$0xff] }
  0x9a   : > { %v436_v24 = vld [vmem:[#allocation4 + $0x328] sm:$0xff]  ;;  %732 = vmatprep.subr.mxu1 %v568_v21  ;;  %v435_v26 = vld [vmem:[#allocation4 + $0x320] sm:$0xff]  ;;  %656 = vmatpush2.msra.mxu0 %v439_v22  ;;  %v390_v12 = vld [vmem:[#allocation4 + $0x1b8] sm:$0xff] }
  0x9b   : > { %v564_v25 = vld [vmem:[#allocation4 + $0x728] sm:$0xff]  ;;  %v563_v27 = vld [vmem:[#allocation4 + $0x720] sm:$0xff]  ;;  %733 = vmatpush2.msra.mxu1 %v567_v23  ;;  %657 = vmatprep.subr.mxu0 %v436_v24  ;;  %v518_v13 = vld [vmem:[#allocation4 + $0x5b8] sm:$0xff] }
  0x9c   : > { %v432_v28 = vld [vmem:[#allocation4 + $0x308] sm:$0xff]  ;;  %734 = vmatprep.subr.mxu1 %v564_v25  ;;  %v431_v30 = vld [vmem:[#allocation4 + $0x300] sm:$0xff]  ;;  %658 = vmatpush2.msra.mxu0 %v435_v26  ;;  %v389_v15 = vld [vmem:[#allocation4 + $0x1b0] sm:$0xff] }
  0x9d   : > { %v560_v29 = vld [vmem:[#allocation4 + $0x708] sm:$0xff]  ;;  %v559_v31 = vld [vmem:[#allocation4 + $0x700] sm:$0xff]  ;;  %735 = vmatpush2.msra.mxu1 %v563_v27  ;;  %659 = vmatprep.subr.mxu0 %v432_v28  ;;  %v517_v16 = vld [vmem:[#allocation4 + $0x5b0] sm:$0xff] }
  0x9e   : > { %v428_v32 = vld [vmem:[#allocation4 + $0x2e8] sm:$0xff]  ;;  %736 = vmatprep.subr.mxu1 %v560_v29  ;;  %v427_v34 = vld [vmem:[#allocation4 + $0x2e0] sm:$0xff]  ;;  %660 = vmatpush2.msra.mxu0 %v431_v30  ;;  %v386_v18 = vld [vmem:[#allocation4 + $0x198] sm:$0xff] }
  0x9f   : > { %v556_v33 = vld [vmem:[#allocation4 + $0x6e8] sm:$0xff]  ;;  %v555_v35 = vld [vmem:[#allocation4 + $0x6e0] sm:$0xff]  ;;  %737 = vmatpush2.msra.mxu1 %v559_v31  ;;  %661 = vmatprep.subr.mxu0 %v428_v32  ;;  %v514_v19 = vld [vmem:[#allocation4 + $0x598] sm:$0xff] }
  0xa0   : > { %v424_v36 = vld [vmem:[#allocation4 + $0x2c8] sm:$0xff]  ;;  %738 = vmatprep.subr.mxu1 %v556_v33  ;;  %v423_v38 = vld [vmem:[#allocation4 + $0x2c0] sm:$0xff]  ;;  %662 = vmatpush2.msra.mxu0 %v427_v34  ;;  %v2021_v20 = vld [vmem:[%s1983_s24 + $0x38] sm:$0xff] }
  0xa1   : > { %v552_v37 = vld [vmem:[#allocation4 + $0x6c8] sm:$0xff]  ;;  %v551_v39 = vld [vmem:[#allocation4 + $0x6c0] sm:$0xff]  ;;  %739 = vmatpush2.msra.mxu1 %v555_v35  ;;  %663 = vmatprep.subr.mxu0 %v424_v36  ;;  %v385_v21 = vld [vmem:[#allocation4 + $0x190] sm:$0xff] }
  0xa2   : > { %v420_v40 = vld [vmem:[#allocation4 + $0x2a8] sm:$0xff]  ;;  %740 = vmatprep.subr.mxu1 %v552_v37  ;;  %v419_v42 = vld [vmem:[#allocation4 + $0x2a0] sm:$0xff]  ;;  %664 = vmatpush2.msra.mxu0 %v423_v38  ;;  %v513_v22 = vld [vmem:[#allocation4 + $0x590] sm:$0xff] }
  0xa3   : > { %v548_v41 = vld [vmem:[#allocation4 + $0x6a8] sm:$0xff]  ;;  %v547_v43 = vld [vmem:[#allocation4 + $0x6a0] sm:$0xff]  ;;  %741 = vmatpush2.msra.mxu1 %v551_v39  ;;  %665 = vmatprep.subr.mxu0 %v420_v40  ;;  %v382_v23 = vld [vmem:[#allocation4 + $0x178] sm:$0xff] }
  0xa4   : > { %v416_v44 = vld [vmem:[#allocation4 + $0x288] sm:$0xff]  ;;  %742 = vmatprep.subr.mxu1 %v548_v41  ;;  %v415_v46 = vld [vmem:[#allocation4 + $0x280] sm:$0xff]  ;;  %666 = vmatpush2.msra.mxu0 %v419_v42  ;;  %v2025_v24 = vld [vmem:[%s1983_s24 + $0x30] sm:$0xff] }
  0xa5   : > { %v544_v45 = vld [vmem:[#allocation4 + $0x688] sm:$0xff]  ;;  %v543_v47 = vld [vmem:[#allocation4 + $0x680] sm:$0xff]  ;;  %743 = vmatpush2.msra.mxu1 %v547_v43  ;;  %667 = vmatprep.subr.mxu0 %v416_v44  ;;  %v510_v25 = vld [vmem:[#allocation4 + $0x578] sm:$0xff] }
  0xa6   : > { %v412_v48 = vld [vmem:[#allocation4 + $0x268] sm:$0xff]  ;;  %744 = vmatprep.subr.mxu1 %v544_v45  ;;  %v411_v50 = vld [vmem:[#allocation4 + $0x260] sm:$0xff]  ;;  %668 = vmatpush2.msra.mxu0 %v415_v46  ;;  %v381_v26 = vld [vmem:[#allocation4 + $0x170] sm:$0xff] }
  0xa7   : > { %v540_v49 = vld [vmem:[#allocation4 + $0x668] sm:$0xff]  ;;  %v539_v51 = vld [vmem:[#allocation4 + $0x660] sm:$0xff]  ;;  %745 = vmatpush2.msra.mxu1 %v543_v47  ;;  %669 = vmatprep.subr.mxu0 %v412_v48  ;;  %v509_v27 = vld [vmem:[#allocation4 + $0x570] sm:$0xff] }
  0xa8   : > { %v408_v52 = vld [vmem:[#allocation4 + $0x248] sm:$0xff]  ;;  %746 = vmatprep.subr.mxu1 %v540_v49  ;;  %v407_v54 = vld [vmem:[#allocation4 + $0x240] sm:$0xff]  ;;  %670 = vmatpush2.msra.mxu0 %v411_v50  ;;  %v378_v28 = vld [vmem:[#allocation4 + $0x158] sm:$0xff] }
  0xa9   : > { %v536_v53 = vld [vmem:[#allocation4 + $0x648] sm:$0xff]  ;;  %v535_v55 = vld [vmem:[#allocation4 + $0x640] sm:$0xff]  ;;  %747 = vmatpush2.msra.mxu1 %v539_v51  ;;  %671 = vmatprep.subr.mxu0 %v408_v52  ;;  %v506_v29 = vld [vmem:[#allocation4 + $0x558] sm:$0xff] }
  0xaa   : > { %v404_v56 = vld [vmem:[#allocation4 + $0x228] sm:$0xff]  ;;  %748 = vmatprep.subr.mxu1 %v536_v53  ;;  %v403_v58 = vld [vmem:[#allocation4 + $0x220] sm:$0xff]  ;;  %672 = vmatpush2.msra.mxu0 %v407_v54  ;;  %v377_v30 = vld [vmem:[#allocation4 + $0x150] sm:$0xff] }
  0xab   : > { %v532_v57 = vld [vmem:[#allocation4 + $0x628] sm:$0xff]  ;;  %v531_v59 = vld [vmem:[#allocation4 + $0x620] sm:$0xff]  ;;  %749 = vmatpush2.msra.mxu1 %v535_v55  ;;  %673 = vmatprep.subr.mxu0 %v404_v56  ;;  %v505_v31 = vld [vmem:[#allocation4 + $0x550] sm:$0xff] }
  0xac   : > { %v400_v60 = vld [vmem:[#allocation4 + $0x208] sm:$0xff]  ;;  %750 = vmatprep.subr.mxu1 %v532_v57  ;;  %v399_v62 = vld [vmem:[#allocation4 + $0x200] sm:$0xff]  ;;  %674 = vmatpush2.msra.mxu0 %v403_v58  ;;  %v374_v32 = vld [vmem:[#allocation4 + $0x138] sm:$0xff] }
  0xad   : > { %v528_v61 = vld [vmem:[#allocation4 + $0x608] sm:$0xff]  ;;  %751 = vmatpush2.msra.mxu1 %v531_v59  ;;  %v527_v0 = vld [vmem:[#allocation4 + $0x600] sm:$0xff]  ;;  %675 = vmatprep.subr.mxu0 %v400_v60  ;;  %v502_v33 = vld [vmem:[#allocation4 + $0x538] sm:$0xff] }
  0xae   : > { %v1998_v63 = vld [vmem:[%s1983_s24 + $0x8] sm:$0xff]  ;;  %v2001_v1 = vld [vmem:[%s1983_s24] sm:$0xff]  ;;  %752 = vmatprep.subr.mxu1 %v528_v61  ;;  %676 = vmatpush2.msra.mxu0 %v399_v62  ;;  %v373_v34 = vld [vmem:[#allocation4 + $0x130] sm:$0xff] }
  0xaf   : > { %677 = vmatprep.mubr.f32.mxu0 %v1998_v63  ;;  %753 = vmatpush2.msra.mxu1 %v527_v0  ;;  %v2014_v14 = vld [vmem:[%s1983_s24 + $0x28] sm:$0xff]  ;;  %v2017_v17 = vld [vmem:[%s1983_s24 + $0x20] sm:$0xff]  ;;  %v501_v35 = vld [vmem:[#allocation4 + $0x530] sm:$0xff] }
  0xb0   : > { %678 = vmatmul.mubr.f32.vlgmr.msra.gmra.mxu0 %v2001_v1  ;;  %754 = vmatprep.mubr.f32.mxu1 %v2004_v2  ;;  %v370_v36 = vld [vmem:[#allocation4 + $0x118] sm:$0xff]  ;;  %v369_v38 = vld [vmem:[#allocation4 + $0x110] sm:$0xff] }
  0xb1   : > { %767 = vmatprep.subr.mxu0 %v398_v3  ;;  %844 = vmatprep.subr.mxu1 %v526_v4  ;;  %v498_v37 = vld [vmem:[#allocation4 + $0x518] sm:$0xff]  ;;  %v497_v39 = vld [vmem:[#allocation4 + $0x510] sm:$0xff] }
  0xb2   : > { %755 = vmatmul.mubr.f32.vlgmr.msra.gmra.mxu1 %v2008_v5  ;;  %768 = vmatpush1.msra.mxu0 %v397_v6  ;;  %v366_v40 = vld [vmem:[#allocation4 + $0xf8] sm:$0xff]  ;;  %v365_v42 = vld [vmem:[#allocation4 + $0xf0] sm:$0xff] }
  0xb3   : > { %845 = vmatpush1.msra.mxu1 %v525_v7  ;;  %769 = vmatprep.subr.mxu0 %v394_v8  ;;  %v494_v41 = vld [vmem:[#allocation4 + $0x4f8] sm:$0xff]  ;;  %v493_v43 = vld [vmem:[#allocation4 + $0x4f0] sm:$0xff] }
  0xb4   : > { %846 = vmatprep.subr.mxu1 %v522_v9  ;;  %770 = vmatpush1.msra.mxu0 %v393_v10  ;;  %v362_v44 = vld [vmem:[#allocation4 + $0xd8] sm:$0xff]  ;;  %v361_v46 = vld [vmem:[#allocation4 + $0xd0] sm:$0xff] }
  0xb5   : > { %847 = vmatpush1.msra.mxu1 %v521_v11  ;;  %771 = vmatprep.subr.mxu0 %v390_v12  ;;  %v490_v45 = vld [vmem:[#allocation4 + $0x4d8] sm:$0xff]  ;;  %v489_v47 = vld [vmem:[#allocation4 + $0x4d0] sm:$0xff] }
  0xb6   : > { %848 = vmatprep.subr.mxu1 %v518_v13  ;;  %683 = vmatprep.mubr.f32.mxu0 %v2014_v14  ;;  %v358_v48 = vld [vmem:[#allocation4 + $0xb8] sm:$0xff]  ;;  %v357_v50 = vld [vmem:[#allocation4 + $0xb0] sm:$0xff] }
  0xb7   : > { %772 = vmatpush1.msra.mxu0 %v389_v15  ;;  %849 = vmatpush1.msra.mxu1 %v517_v16  ;;  %v486_v49 = vld [vmem:[#allocation4 + $0x4b8] sm:$0xff]  ;;  %v485_v51 = vld [vmem:[#allocation4 + $0x4b0] sm:$0xff] }
  0xb8   : > { %684 = vmatmul.mubr.f32.gmra.mxu0 %v2017_v17  ;;  %773 = vmatprep.subr.mxu0 %v386_v18  ;;  %v354_v52 = vld [vmem:[#allocation4 + $0x98] sm:$0xff]  ;;  %v353_v54 = vld [vmem:[#allocation4 + $0x90] sm:$0xff] }
  0xb9   : > { %850 = vmatprep.subr.mxu1 %v514_v19  ;;  %760 = vmatprep.mubr.f32.mxu1 %v2021_v20  ;;  %v482_v53 = vld [vmem:[#allocation4 + $0x498] sm:$0xff]  ;;  %v481_v55 = vld [vmem:[#allocation4 + $0x490] sm:$0xff] }
  0xba   : > { %774 = vmatpush1.msra.mxu0 %v385_v21  ;;  %851 = vmatpush1.msra.mxu1 %v513_v22  ;;  %v350_v56 = vld [vmem:[#allocation4 + $0x78] sm:$0xff]  ;;  %v349_v58 = vld [vmem:[#allocation4 + $0x70] sm:$0xff] }
  0xbb   : > { %775 = vmatprep.subr.mxu0 %v382_v23  ;;  %761 = vmatmul.mubr.f32.gmra.mxu1 %v2025_v24  ;;  %v478_v57 = vld [vmem:[#allocation4 + $0x478] sm:$0xff]  ;;  %v477_v59 = vld [vmem:[#allocation4 + $0x470] sm:$0xff] }
  0xbc   : > { %852 = vmatprep.subr.mxu1 %v510_v25  ;;  %776 = vmatpush1.msra.mxu0 %v381_v26  ;;  %v346_v60 = vld [vmem:[#allocation4 + $0x58] sm:$0xff]  ;;  %v345_v62 = vld [vmem:[#allocation4 + $0x50] sm:$0xff] }
  0xbd   : > { %853 = vmatpush1.msra.mxu1 %v509_v27  ;;  %777 = vmatprep.subr.mxu0 %v378_v28  ;;  %v474_v61 = vld [vmem:[#allocation4 + $0x458] sm:$0xff]  ;;  %v473_v0 = vld [vmem:[#allocation4 + $0x450] sm:$0xff] }
  0xbe   : > { %854 = vmatprep.subr.mxu1 %v506_v29  ;;  %778 = vmatpush1.msra.mxu0 %v377_v30  ;;  %v342_v3 = vld [vmem:[#allocation4 + $0x38] sm:$0xff]  ;;  %v341_v6 = vld [vmem:[#allocation4 + $0x30] sm:$0xff] }
  0xbf   : > { %855 = vmatpush1.msra.mxu1 %v505_v31  ;;  %779 = vmatprep.subr.mxu0 %v374_v32  ;;  %v470_v4 = vld [vmem:[#allocation4 + $0x438] sm:$0xff]  ;;  %v469_v7 = vld [vmem:[#allocation4 + $0x430] sm:$0xff] }
  0xc0   : > { %856 = vmatprep.subr.mxu1 %v502_v33  ;;  %780 = vmatpush1.msra.mxu0 %v373_v34  ;;  %v338_v8 = vld [vmem:[#allocation4 + $0x18] sm:$0xff]  ;;  %v337_v10 = vld [vmem:[#allocation4 + $0x10] sm:$0xff] }
  0xc1   : > { %857 = vmatpush1.msra.mxu1 %v501_v35  ;;  %781 = vmatprep.subr.mxu0 %v370_v36  ;;  %v466_v9 = vld [vmem:[#allocation4 + $0x418] sm:$0xff]  ;;  %v465_v11 = vld [vmem:[#allocation4 + $0x410] sm:$0xff] }
  0xc2   : > { %858 = vmatprep.subr.mxu1 %v498_v37  ;;  %782 = vmatpush1.msra.mxu0 %v369_v38  ;;  %v462_v12 = vld [vmem:[#allocation4 + $0x3f8] sm:$0xff]  ;;  %v461_v15 = vld [vmem:[#allocation4 + $0x3f0] sm:$0xff] }
  0xc3   : > { %859 = vmatpush1.msra.mxu1 %v497_v39  ;;  %783 = vmatprep.subr.mxu0 %v366_v40  ;;  %v590_v13 = vld [vmem:[#allocation4 + $0x7f8] sm:$0xff]  ;;  %v589_v16 = vld [vmem:[#allocation4 + $0x7f0] sm:$0xff] }
  0xc4   : > { %860 = vmatprep.subr.mxu1 %v494_v41  ;;  %784 = vmatpush1.msra.mxu0 %v365_v42  ;;  %v458_v18 = vld [vmem:[#allocation4 + $0x3d8] sm:$0xff]  ;;  %v457_v21 = vld [vmem:[#allocation4 + $0x3d0] sm:$0xff] }
  0xc5   : > { %861 = vmatpush1.msra.mxu1 %v493_v43  ;;  %785 = vmatprep.subr.mxu0 %v362_v44  ;;  %v586_v19 = vld [vmem:[#allocation4 + $0x7d8] sm:$0xff]  ;;  %v585_v22 = vld [vmem:[#allocation4 + $0x7d0] sm:$0xff] }
  0xc6   : > { %862 = vmatprep.subr.mxu1 %v490_v45  ;;  %786 = vmatpush1.msra.mxu0 %v361_v46  ;;  %v454_v23 = vld [vmem:[#allocation4 + $0x3b8] sm:$0xff]  ;;  %v453_v26 = vld [vmem:[#allocation4 + $0x3b0] sm:$0xff] }
  0xc7   : > { %863 = vmatpush1.msra.mxu1 %v489_v47  ;;  %787 = vmatprep.subr.mxu0 %v358_v48  ;;  %v582_v25 = vld [vmem:[#allocation4 + $0x7b8] sm:$0xff]  ;;  %v581_v27 = vld [vmem:[#allocation4 + $0x7b0] sm:$0xff] }
  0xc8   : > { %864 = vmatprep.subr.mxu1 %v486_v49  ;;  %788 = vmatpush1.msra.mxu0 %v357_v50  ;;  %v450_v28 = vld [vmem:[#allocation4 + $0x398] sm:$0xff]  ;;  %v449_v30 = vld [vmem:[#allocation4 + $0x390] sm:$0xff] }
  0xc9   : > { %865 = vmatpush1.msra.mxu1 %v485_v51  ;;  %789 = vmatprep.subr.mxu0 %v354_v52  ;;  %v578_v29 = vld [vmem:[#allocation4 + $0x798] sm:$0xff]  ;;  %v577_v31 = vld [vmem:[#allocation4 + $0x790] sm:$0xff] }
  0xca   : > { %866 = vmatprep.subr.mxu1 %v482_v53  ;;  %790 = vmatpush1.msra.mxu0 %v353_v54  ;;  %v446_v32 = vld [vmem:[#allocation4 + $0x378] sm:$0xff]  ;;  %v445_v34 = vld [vmem:[#allocation4 + $0x370] sm:$0xff] }
  0xcb   : > { %867 = vmatpush1.msra.mxu1 %v481_v55  ;;  %791 = vmatprep.subr.mxu0 %v350_v56  ;;  %v574_v33 = vld [vmem:[#allocation4 + $0x778] sm:$0xff]  ;;  %v573_v35 = vld [vmem:[#allocation4 + $0x770] sm:$0xff] }
  0xcc   : > { %868 = vmatprep.subr.mxu1 %v478_v57  ;;  %792 = vmatpush1.msra.mxu0 %v349_v58  ;;  %v442_v36 = vld [vmem:[#allocation4 + $0x358] sm:$0xff]  ;;  %v441_v38 = vld [vmem:[#allocation4 + $0x350] sm:$0xff] }
  0xcd   : > { %869 = vmatpush1.msra.mxu1 %v477_v59  ;;  %793 = vmatprep.subr.mxu0 %v346_v60  ;;  %v570_v37 = vld [vmem:[#allocation4 + $0x758] sm:$0xff]  ;;  %v569_v39 = vld [vmem:[#allocation4 + $0x750] sm:$0xff] }
  0xce   : > { %870 = vmatprep.subr.mxu1 %v474_v61  ;;  %794 = vmatpush1.msra.mxu0 %v345_v62  ;;  %v438_v40 = vld [vmem:[#allocation4 + $0x338] sm:$0xff]  ;;  %v437_v42 = vld [vmem:[#allocation4 + $0x330] sm:$0xff] }
  0xcf   : > { %871 = vmatpush1.msra.mxu1 %v473_v0  ;;  %795 = vmatprep.subr.mxu0 %v342_v3  ;;  %v566_v41 = vld [vmem:[#allocation4 + $0x738] sm:$0xff]  ;;  %v565_v43 = vld [vmem:[#allocation4 + $0x730] sm:$0xff] }
  0xd0   : > { %872 = vmatprep.subr.mxu1 %v470_v4  ;;  %796 = vmatpush1.msra.mxu0 %v341_v6  ;;  %v434_v44 = vld [vmem:[#allocation4 + $0x318] sm:$0xff]  ;;  %v433_v46 = vld [vmem:[#allocation4 + $0x310] sm:$0xff] }
  0xd1   : > { %873 = vmatpush1.msra.mxu1 %v469_v7  ;;  %797 = vmatprep.subr.mxu0 %v338_v8  ;;  %v562_v45 = vld [vmem:[#allocation4 + $0x718] sm:$0xff]  ;;  %v561_v47 = vld [vmem:[#allocation4 + $0x710] sm:$0xff] }
  0xd2   : > { %874 = vmatprep.subr.mxu1 %v466_v9  ;;  %798 = vmatpush1.msra.mxu0 %v337_v10  ;;  %v430_v48 = vld [vmem:[#allocation4 + $0x2f8] sm:$0xff]  ;;  %v429_v50 = vld [vmem:[#allocation4 + $0x2f0] sm:$0xff] }
  0xd3   : > { %875 = vmatpush1.msra.mxu1 %v465_v11  ;;  %799 = vmatprep.subr.mxu0 %v462_v12  ;;  %v558_v49 = vld [vmem:[#allocation4 + $0x6f8] sm:$0xff]  ;;  %v557_v51 = vld [vmem:[#allocation4 + $0x6f0] sm:$0xff] }
  0xd4   : > { %876 = vmatprep.subr.mxu1 %v590_v13  ;;  %800 = vmatpush2.msra.mxu0 %v461_v15  ;;  %v426_v52 = vld [vmem:[#allocation4 + $0x2d8] sm:$0xff]  ;;  %v425_v54 = vld [vmem:[#allocation4 + $0x2d0] sm:$0xff] }
  0xd5   : > { %877 = vmatpush2.msra.mxu1 %v589_v16  ;;  %801 = vmatprep.subr.mxu0 %v458_v18  ;;  %v554_v53 = vld [vmem:[#allocation4 + $0x6d8] sm:$0xff]  ;;  %v553_v55 = vld [vmem:[#allocation4 + $0x6d0] sm:$0xff] }
  0xd6   : > { %878 = vmatprep.subr.mxu1 %v586_v19  ;;  %802 = vmatpush2.msra.mxu0 %v457_v21  ;;  %v422_v56 = vld [vmem:[#allocation4 + $0x2b8] sm:$0xff]  ;;  %v421_v58 = vld [vmem:[#allocation4 + $0x2b0] sm:$0xff] }
  0xd7   : > { %879 = vmatpush2.msra.mxu1 %v585_v22  ;;  %803 = vmatprep.subr.mxu0 %v454_v23  ;;  %v550_v57 = vld [vmem:[#allocation4 + $0x6b8] sm:$0xff]  ;;  %v549_v59 = vld [vmem:[#allocation4 + $0x6b0] sm:$0xff] }
  0xd8   : > { %880 = vmatprep.subr.mxu1 %v582_v25  ;;  %804 = vmatpush2.msra.mxu0 %v453_v26  ;;  %v418_v60 = vld [vmem:[#allocation4 + $0x298] sm:$0xff]  ;;  %v417_v62 = vld [vmem:[#allocation4 + $0x290] sm:$0xff] }
  0xd9   : > { %881 = vmatpush2.msra.mxu1 %v581_v27  ;;  %805 = vmatprep.subr.mxu0 %v450_v28  ;;  %v546_v61 = vld [vmem:[#allocation4 + $0x698] sm:$0xff]  ;;  %v545_v0 = vld [vmem:[#allocation4 + $0x690] sm:$0xff] }
  0xda   : > { %882 = vmatprep.subr.mxu1 %v578_v29  ;;  %806 = vmatpush2.msra.mxu0 %v449_v30  ;;  %v414_v3 = vld [vmem:[#allocation4 + $0x278] sm:$0xff]  ;;  %v413_v6 = vld [vmem:[#allocation4 + $0x270] sm:$0xff]  ;;  %v953_v30 = vld [vmem:[#allocation7 + $0xc0] sm:$0xff] }
  0xdb   : > { %883 = vmatpush2.msra.mxu1 %v577_v31  ;;  %807 = vmatprep.subr.mxu0 %v446_v32  ;;  %v542_v4 = vld [vmem:[#allocation4 + $0x678] sm:$0xff]  ;;  %v541_v7 = vld [vmem:[#allocation4 + $0x670] sm:$0xff]  ;;  %v937_v31 = vld [vmem:[#allocation7 + $0x40] sm:$0xff] }
  0xdc   : > { %884 = vmatprep.subr.mxu1 %v574_v33  ;;  %808 = vmatpush2.msra.mxu0 %v445_v34  ;;  %v410_v8 = vld [vmem:[#allocation4 + $0x258] sm:$0xff]  ;;  %v409_v10 = vld [vmem:[#allocation4 + $0x250] sm:$0xff] }
  0xdd   : > { %885 = vmatpush2.msra.mxu1 %v573_v35  ;;  %809 = vmatprep.subr.mxu0 %v442_v36  ;;  %v538_v9 = vld [vmem:[#allocation4 + $0x658] sm:$0xff]  ;;  %v537_v11 = vld [vmem:[#allocation4 + $0x650] sm:$0xff] }
  0xde   : > { %886 = vmatprep.subr.mxu1 %v570_v37  ;;  %810 = vmatpush2.msra.mxu0 %v441_v38  ;;  %v406_v12 = vld [vmem:[#allocation4 + $0x238] sm:$0xff]  ;;  %v405_v15 = vld [vmem:[#allocation4 + $0x230] sm:$0xff]  ;;  %v949_v38 = vld [vmem:[#allocation7 + $0xa0] sm:$0xff] }
  0xdf   : > { %887 = vmatpush2.msra.mxu1 %v569_v39  ;;  %811 = vmatprep.subr.mxu0 %v438_v40  ;;  %v534_v13 = vld [vmem:[#allocation4 + $0x638] sm:$0xff]  ;;  %v533_v16 = vld [vmem:[#allocation4 + $0x630] sm:$0xff]  ;;  %v933_v39 = vld [vmem:[#allocation7 + $0x20] sm:$0xff] }
  0xe0   : > { %888 = vmatprep.subr.mxu1 %v566_v41  ;;  %812 = vmatpush2.msra.mxu0 %v437_v42  ;;  %v402_v18 = vld [vmem:[#allocation4 + $0x218] sm:$0xff]  ;;  %v401_v21 = vld [vmem:[#allocation4 + $0x210] sm:$0xff] }
  0xe1   : > { %889 = vmatpush2.msra.mxu1 %v565_v43  ;;  %813 = vmatprep.subr.mxu0 %v434_v44  ;;  %v530_v19 = vld [vmem:[#allocation4 + $0x618] sm:$0xff]  ;;  %v529_v22 = vld [vmem:[#allocation4 + $0x610] sm:$0xff] }
  0xe2   : > { %890 = vmatprep.subr.mxu1 %v562_v45  ;;  %814 = vmatpush2.msra.mxu0 %v433_v46  ;;  %v960_v23 = vld [vmem:[#allocation7 + $0xf8] sm:$0xff]  ;;  %v959_v26 = vld [vmem:[#allocation7 + $0xf0] sm:$0xff]  ;;  %v954_v28 = vld [vmem:[#allocation7 + $0xc8] sm:$0xff] }
  0xe3   : > { %891 = vmatpush2.msra.mxu1 %v561_v47  ;;  %815 = vmatprep.subr.mxu0 %v430_v48  ;;  %v944_v25 = vld [vmem:[#allocation7 + $0x78] sm:$0xff]  ;;  %v943_v27 = vld [vmem:[#allocation7 + $0x70] sm:$0xff]  ;;  %v938_v29 = vld [vmem:[#allocation7 + $0x48] sm:$0xff]  ;;  %v593_v48 = vlaneseq }
  0xe4   : > { %892 = vmatprep.subr.mxu1 %v558_v49  ;;  %816 = vmatpush2.msra.mxu0 %v429_v50  ;;  %v952_v32 = vld [vmem:[#allocation7 + $0xb8] sm:$0xff]  ;;  %v951_v34 = vld [vmem:[#allocation7 + $0xb0] sm:$0xff]  ;;  %v950_v36 = vld [vmem:[#allocation7 + $0xa8] sm:$0xff] }
  0xe5   : > { %893 = vmatpush2.msra.mxu1 %v557_v51  ;;  %817 = vmatprep.subr.mxu0 %v426_v52  ;;  %v936_v33 = vld [vmem:[#allocation7 + $0x38] sm:$0xff]  ;;  %v935_v35 = vld [vmem:[#allocation7 + $0x30] sm:$0xff]  ;;  %v934_v37 = vld [vmem:[#allocation7 + $0x28] sm:$0xff]  ;;  %v594_v49 = vshrl.u32 %v593_v48, 7 }
  0xe6   : > { %894 = vmatprep.subr.mxu1 %v554_v53  ;;  %818 = vmatpush2.msra.mxu0 %v425_v54  ;;  %v948_v40 = vld [vmem:[#allocation7 + $0x98] sm:$0xff]  ;;  %v947_v42 = vld [vmem:[#allocation7 + $0x90] sm:$0xff]  ;;  %v946_v44 = vld [vmem:[#allocation7 + $0x88] sm:$0xff] }
  0xe7   : > { %895 = vmatpush2.msra.mxu1 %v553_v55  ;;  %819 = vmatprep.subr.mxu0 %v422_v56  ;;  %v932_v41 = vld [vmem:[#allocation7 + $0x18] sm:$0xff]  ;;  %v931_v43 = vld [vmem:[#allocation7 + $0x10] sm:$0xff]  ;;  %v930_v45 = vld [vmem:[#allocation7 + $0x8] sm:$0xff]  ;;  %v595_v50 = vsub.s32 0, %v594_v49  ;;  %v599_v52 = vsub.s32 1, %v594_v49 }
  0xe8   : > { %896 = vmatprep.subr.mxu1 %v550_v57  ;;  %820 = vmatpush2.msra.mxu0 %v421_v58  ;;  %v945_v46 = vld [vmem:[#allocation7 + $0x80] sm:$0xff]  ;;  %v591_v51 = vld [vmem:[#allocation6] sm:$0xf] }
  0xe9   : > { %897 = vmatpush2.msra.mxu1 %v549_v59  ;;  %821 = vmatprep.subr.mxu0 %v418_v60  ;;  %v929_v47 = vld [vmem:[#allocation7] sm:$0xff]  ;;  %v596_v53 = vrot.slane %v591_v51, %v595_v50  ;;  %v600_v54 = vrot.slane %v591_v51, %v599_v52 }
  0xea   : > { %898 = vmatprep.subr.mxu1 %v546_v61  ;;  %822 = vmatpush2.msra.mxu0 %v417_v62 }
  0xeb   : > { %899 = vmatpush2.msra.mxu1 %v545_v0  ;;  %823 = vmatprep.subr.mxu0 %v414_v3 }
  0xec   : > { %900 = vmatprep.subr.mxu1 %v542_v4  ;;  %824 = vmatpush2.msra.mxu0 %v413_v6 }
  0xed   : > { %901 = vmatpush2.msra.mxu1 %v541_v7  ;;  %825 = vmatprep.subr.mxu0 %v410_v8 }
  0xee   : > { %902 = vmatprep.subr.mxu1 %v538_v9  ;;  %826 = vmatpush2.msra.mxu0 %v409_v10 }
  0xef   : > { %903 = vmatpush2.msra.mxu1 %v537_v11  ;;  %827 = vmatprep.subr.mxu0 %v406_v12 }
  0xf0   : > { %904 = vmatprep.subr.mxu1 %v534_v13  ;;  %828 = vmatpush2.msra.mxu0 %v405_v15 }
  0xf1   : > { %905 = vmatpush2.msra.mxu1 %v533_v16  ;;  %829 = vmatprep.subr.mxu0 %v402_v18  ;;  %v603_v16 = vsub.s32 2, %v594_v49  ;;  %v607_v18 = vsub.s32 3, %v594_v49 }
  0xf2   : > { %906 = vmatprep.subr.mxu1 %v530_v19  ;;  %830 = vmatpush2.msra.mxu0 %v401_v21 }
  0xf3   : > { %831 = vmatprep.mubr.f32.mxu0 %v1998_v63  ;;  %907 = vmatpush2.msra.mxu1 %v529_v22  ;;  %v958_v63 = vld [vmem:[#allocation7 + $0xe8] sm:$0xff]  ;;  %v604_v19 = vrot.slane %v591_v51, %v603_v16  ;;  %v608_v21 = vrot.slane %v591_v51, %v607_v18 }
  0xf4   : > { %908 = vmatprep.mubr.f32.mxu1 %v2004_v2  ;;  %832 = vmatmul.mubr.f32.vlgmr.msra.gmra.mxu0 %v2001_v1  ;;  %v942_v1 = vld [vmem:[#allocation7 + $0x68] sm:$0xff]  ;;  %v957_v2 = vld [vmem:[#allocation7 + $0xe0] sm:$0xff] }
  0xf5   : > { %909 = vmatmul.mubr.f32.vlgmr.msra.gmra.mxu1 %v2008_v5  ;;  %837 = vmatprep.mubr.f32.mxu0 %v2014_v14  ;;  %v941_v5 = vld [vmem:[#allocation7 + $0x60] sm:$0xff]  ;;  %v956_v14 = vld [vmem:[#allocation7 + $0xd8] sm:$0xff] }
  0xf6   : > { %914 = vmatprep.mubr.f32.mxu1 %v2021_v20  ;;  %1381 = vmatprep.subr.mxu0 %v960_v23  ;;  %v940_v20 = vld [vmem:[#allocation7 + $0x58] sm:$0xff] }
  0xf7   : > { %1419 = vmatprep.subr.mxu1 %v960_v23  ;;  %1382 = vmatpush3.msra.mxu0 %v944_v25 }
  0xf8   : > { %1435 = vmatpush3.msra.mxu1 %v944_v25  ;;  %838 = vmatmul.mubr.f32.gmra.mxu0 %v2017_v17  ;;  %v955_v17 = vld [vmem:[#allocation7 + $0xd0] sm:$0xff] }
  0xf9   : > { %915 = vmatmul.mubr.f32.gmra.mxu1 %v2025_v24  ;;  %1383 = vmatprep.subr.mxu0 %v959_v26  ;;  %v939_v24 = vld [vmem:[#allocation7 + $0x50] sm:$0xff] }
  0xfa   : > { %1420 = vmatprep.subr.mxu1 %v959_v26  ;;  %1384 = vmatpush3.msra.mxu0 %v943_v27  ;;  %v961_v26 = vld [vmem:[%s2098_s4] sm:$0x3] }
  0xfb   : > { %1436 = vmatpush3.msra.mxu1 %v943_v27  ;;  %1385 = vmatprep.subr.mxu0 %v958_v63 }
  0xfc   : > { %1421 = vmatprep.subr.mxu1 %v958_v63  ;;  %1386 = vmatpush3.msra.mxu0 %v942_v1 }
  0xfd   : > { %1437 = vmatpush3.msra.mxu1 %v942_v1  ;;  %1387 = vmatprep.subr.mxu0 %v957_v2 }
  0xfe   : > { %1422 = vmatprep.subr.mxu1 %v957_v2  ;;  %1388 = vmatpush3.msra.mxu0 %v941_v5 }
  0xff   : > { %1438 = vmatpush3.msra.mxu1 %v941_v5  ;;  %1389 = vmatprep.subr.mxu0 %v956_v14 }
 0x100   : > { %1423 = vmatprep.subr.mxu1 %v956_v14  ;;  %1390 = vmatpush3.msra.mxu0 %v940_v20 }
 0x101   : > { %1439 = vmatpush3.msra.mxu1 %v940_v20  ;;  %1391 = vmatprep.subr.mxu0 %v955_v17  ;;  %v966_v20 = vrot.slane %v961_v26, %v595_v50  ;;  %v1357_v50 = vld [vmem:[%s2099_s5] ss:$0 sm:$0xff] }
 0x102   : > { %1424 = vmatprep.subr.mxu1 %v955_v17  ;;  %1392 = vmatpush3.msra.mxu0 %v939_v24 }
 0x103   : > { %1440 = vmatpush3.msra.mxu1 %v939_v24  ;;  %1393 = vmatprep.subr.mxu0 %v954_v28 }
 0x104   : > { %1425 = vmatprep.subr.mxu1 %v954_v28  ;;  %1394 = vmatpush3.msra.mxu0 %v938_v29 }
 0x105   : > { %1441 = vmatpush3.msra.mxu1 %v938_v29  ;;  %1395 = vmatprep.subr.mxu0 %v953_v30  ;;  %v970_v29 = vrot.slane %v961_v26, %v599_v52 }
 0x106   : > { %1426 = vmatprep.subr.mxu1 %v953_v30  ;;  %1396 = vmatpush3.msra.mxu0 %v937_v31 }
 0x107   : > { %1442 = vmatpush3.msra.mxu1 %v937_v31  ;;  %1397 = vmatprep.subr.mxu0 %v952_v32 }
 0x108   : > { %1427 = vmatprep.subr.mxu1 %v952_v32  ;;  %1398 = vmatpush3.msra.mxu0 %v936_v33 }
 0x109   : > { %1443 = vmatpush3.msra.mxu1 %v936_v33  ;;  %1399 = vmatprep.subr.mxu0 %v951_v34 }
 0x10a   : > { %1428 = vmatprep.subr.mxu1 %v951_v34  ;;  %1400 = vmatpush3.msra.mxu0 %v935_v35 }
 0x10b   : > { %1444 = vmatpush3.msra.mxu1 %v935_v35  ;;  %1401 = vmatprep.subr.mxu0 %v950_v36 }
 0x10c   : > { %1429 = vmatprep.subr.mxu1 %v950_v36  ;;  %1402 = vmatpush3.msra.mxu0 %v934_v37 }
 0x10d   : > { %1445 = vmatpush3.msra.mxu1 %v934_v37  ;;  %1403 = vmatprep.subr.mxu0 %v949_v38 }
 0x10e   : > { %1430 = vmatprep.subr.mxu1 %v949_v38  ;;  %1404 = vmatpush3.msra.mxu0 %v933_v39 }
 0x10f   : > { %1446 = vmatpush3.msra.mxu1 %v933_v39  ;;  %1405 = vmatprep.subr.mxu0 %v948_v40 }
 0x110   : > { %1431 = vmatprep.subr.mxu1 %v948_v40  ;;  %1406 = vmatpush3.msra.mxu0 %v932_v41 }
 0x111   : > { %1447 = vmatpush3.msra.mxu1 %v932_v41  ;;  %1407 = vmatprep.subr.mxu0 %v947_v42 }
 0x112   : > { %1432 = vmatprep.subr.mxu1 %v947_v42  ;;  %1408 = vmatpush3.msra.mxu0 %v931_v43 }
 0x113   : > { %1448 = vmatpush3.msra.mxu1 %v931_v43  ;;  %1409 = vmatprep.subr.mxu0 %v946_v44 }
 0x114   : > { %1433 = vmatprep.subr.mxu1 %v946_v44  ;;  %1410 = vmatpush3.msra.mxu0 %v930_v45 }
 0x115   : > { %1449 = vmatpush3.msra.mxu1 %v930_v45  ;;  %1411 = vmatprep.subr.mxu0 %v945_v46 }
 0x116   : > { %1434 = vmatprep.subr.mxu1 %v945_v46  ;;  %1412 = vmatpush3.msra.mxu0 %v929_v47 }
 0x117   : > { %1450 = vmatpush3.msra.mxu1 %v929_v47  ;;  %v984_v47 = vand.u32 127, %v593_v48 }
 0x119   : > { %vm1067_vm0 = vcmp.eq.s32.totalorder %v984_v47, 8 }
 0x170   : > { %v679_v55 = vpop.f32.mrf.mxu0 }
 0x171   : > { %v680_v56 = vadd.f32 %v679_v55, %v596_v53 }
 0x172   : > { %v756_v57 = vpop.f32.mrf.mxu1  ;;  %v681_v58 = vpop.f32.mrf.mxu0 }
 0x173   : > { %v682_v59 = vadd.f32 %v681_v58, %v600_v54  ;;  %v757_v60 = vadd.f32 %v756_v57, %v680_v56 }
 0x174   : > { %v758_v61 = vpop.f32.mrf.mxu1 }
 0x175   : > { %v759_v62 = vadd.f32 %v758_v61, %v682_v59  ;;  %v921_v3 = vmax.f32 %v757_v60, 0.0 }
 0x177   : > { %v922_v0 = vmax.f32 %v759_v62, 0.0 }
 0x178   : > { %v685_v4 = vpop.f32.mrf.mxu0 }
 0x179   : > { %v686_v6 = vadd.f32 %v685_v4, %v596_v53  ;;  %1056 = vmatprep.mubr.f32.mxu0 %v922_v0 }
 0x17a   : > { %v687_v7 = vpop.f32.mrf.mxu0  ;;  %1057 = vmatmul.mubr.f32.vlgmr.msra.gmra.mxu0 %v921_v3 }
 0x17b   : > { %v688_v8 = vadd.f32 %v687_v7, %v600_v54  ;;  %v762_v9 = vpop.f32.mrf.mxu1 }
 0x17c   : > { %v763_v10 = vadd.f32 %v762_v9, %v686_v6 }
 0x17d   : > { %v764_v11 = vpop.f32.mrf.mxu1 }
 0x17e   : > { %v765_v12 = vadd.f32 %v764_v11, %v688_v8  ;;  %v925_v13 = vmax.f32 %v763_v10, 0.0 }
 0x180   : > { %v926_v15 = vmax.f32 %v765_v12, 0.0 }
 0x182   : > { %1061 = vmatprep.mubr.f32.mxu1 %v926_v15 }
 0x183   : > { %1062 = vmatmul.mubr.f32.vlgmr.msra.gmra.mxu1 %v925_v13 }
 0x1b4   : > { %v833_v22 = vpop.f32.mrf.mxu0 }
 0x1b5   : > { %v910_v23 = vpop.f32.mrf.mxu1  ;;  %v834_v25 = vadd.f32 %v833_v22, %v604_v19 }
 0x1b6   : > { %v835_v27 = vpop.f32.mrf.mxu0 }
 0x1b7   : > { %v912_v63 = vpop.f32.mrf.mxu1  ;;  %v911_v1 = vadd.f32 %v910_v23, %v834_v25  ;;  %v836_v2 = vadd.f32 %v835_v27, %v608_v21 }
 0x1b8   : > { %v839_v5 = vpop.f32.mrf.mxu0 }
 0x1b9   : > { %v916_v14 = vpop.f32.mrf.mxu1  ;;  %v923_v17 = vmax.f32 %v911_v1, 0.0  ;;  %v913_v24 = vadd.f32 %v912_v63, %v836_v2  ;;  %v840_v28 = vadd.f32 %v839_v5, %v604_v19 }
 0x1ba   : > { %v841_v30 = vpop.f32.mrf.mxu0 }
 0x1bb   : > { %v924_v31 = vmax.f32 %v913_v24, 0.0  ;;  %v917_v32 = vadd.f32 %v916_v14, %v840_v28  ;;  %v842_v33 = vadd.f32 %v841_v30, %v608_v21  ;;  %v918_v34 = vpop.f32.mrf.mxu1  ;;  %v973_v37 = vmul.f32 %v966_v20, %v923_v17 }
 0x1bd   : > { %v927_v35 = vmax.f32 %v917_v32, 0.0  ;;  %v919_v36 = vadd.f32 %v918_v34, %v842_v33  ;;  %v974_v38 = vmul.f32 %v970_v29, %v924_v31 }
 0x1bf   : > { %v928_v39 = vmax.f32 %v919_v36, 0.0  ;;  %v977_v40 = vadd.f32 %v974_v38, %v973_v37  ;;  %v975_v41 = vmul.f32 %v966_v20, %v927_v35 }
 0x1c1   : > { %v976_v42 = vmul.f32 %v970_v29, %v928_v39  ;;  %978 = vadd.xlane.f32.xlu0 %v977_v40 }
 0x1c3   : > { %v980_v43 = vadd.f32 %v976_v42, %v975_v41 }
 0x1c5   : > { %981 = vadd.xlane.f32.xlu0 %v980_v43 }
 0x23a   : > { %v1413_v44 = vpop.f32.mrf.mxu0 }
 0x23c   : > { %v1414_v45 = vpop.f32.mrf.mxu0 }
 0x23d   : > { %v1415_v49 = vadd.f32 %v1414_v45, %v1413_v44 }
 0x23f   : > { %v1059_v52 = vadd.f32 %v1415_v49, %v1357_v50 }
 0x243   : > { %v1416_v46 = vpop.f32.mrf.mxu1 }
 0x245   : > { %v1417_v51 = vpop.f32.mrf.mxu1 }
 0x246   : > { %v1418_v53 = vadd.f32 %v1417_v51, %v1416_v46 }
 0x248   : > { %v1064_v57 = vadd.f32 %v1418_v53, %v1357_v50 }
 0x24a   : > { %v979_v54 = vpop.xlane.xlu0 %978 }
 0x24b   : > { %v1070_v55 = vsel %vm1067_vm0, %v979_v54, 0.0 }
 0x24c   : > { %v1072_v56 = vadd.f32 %v1070_v55, %v1059_v52 }
 0x24e   : > { %1074 = vst [vmem:[%s2046_s15] sm:$0xff] %v1072_v56  ;;  %v982_v48 = vpop.xlane.xlu0 %981  ;;  %1082 = sbr.rel (!%p2115_p9) target bundleno = 634 (0x27a), region = 64 }
 0x24f   : > { %v1071_v58 = vsel %vm1067_vm0, %v982_v48, 0.0 }
 0x250   : > { %v1073_v59 = vadd.f32 %v1071_v58, %v1064_v57 }
 0x252   : > { %1075 = vst [vmem:[%s2046_s15 + $0x8] sm:$0xff] %v1073_v59 }
 0x253   : > { %s2123_s21 = smov (!%p1085_p5, %s1084_s21), 2 }
 0x254   : > { %s1360_s10 = sshll.u32 %s2123_s21, 7 }
 0x255   : > { %p1363_p12 = scmp.eq.s32.totalorder %s1360_s10, 0 }
 0x256   : > { %s2063_s8 = sshrl.u32 (!%p1363_p12), %s2123_s21, 1 }
 0x257   : > { %1093 = sbr.rel (%p1363_p12) target bundleno = 634 (0x27a), region = 68  ;;  %p1364_p1 = scmp.le.s32.totalorder (!%p1363_p12), %s2063_s8, 0 }
 0x25c   : > { %1262 = sbr.rel (%p1364_p1) target bundleno = 617 (0x269), region = 150  ;;  %s1765_s25 = smov (!%p1364_p1), %s2057_s30  }
 0x25d   : > { %s1769_s11 = smov (!%p1364_p1), %s2046_s15   ;;  %s1773_s17 = smov (!%p1364_p1), 0  }
 0x25e   : > { %s1777_s18 = smov (!%p1364_p1), 0  }
 0x261 LB: >> { %v1158_v60 = vld [vmem:[%s1771_s11] sm:$0xff]  ;;  %v1160_v61 = vld [vmem:[%s1771_s11 + $0x8] sm:$0xff]  ;;  %s1162_s14 = sadd.s32 1, %s1775_s17  ;;  %s1152_s18 = sadd.s32 1, %s1779_s18   ;;  %s1779_s18 = sphi %s1777_s18, %s1152_s18   ;;  %s1775_s17 = sphi %s1773_s17, %s1774_s17   ;;  %s1771_s11 = sphi %s1769_s11, %s1167_s11   ;;  %s1767_s25 = sphi %s1765_s25, %s1168_s25  }
 0x262   : >> { %1159 = vst [vmem:[%s1767_s25] sm:$0xff] %v1158_v60  ;;  %1161 = vst [vmem:[%s1767_s25 + $0x8] sm:$0xff] %v1160_v61  ;;  %p1163_p8 = scmp.ge.s32.totalorder %s1162_s14, %s2063_s8  ;;  %p1151_p10 = scmp.ge.s32.totalorder %s1152_s18, %s2063_s8 }
 0x264   : >> { %s2125_s14 = smov (%p1163_p8, %s1162_s14), 0  ;;  %1154 = sbr.rel (!%p1151_p10) target bundleno = 609 (0x261), region = 156 }
 0x265   : >> { %s1365_s24 = sshll.u32 %s2125_s14, 4  ;;  %s1774_s17 = smov %s2125_s14  }
 0x266   : >> { %s1167_s11 = scalar_lea.vmem %s2046_s15, %s1365_s24 [#allocation9]   ;;  %s1168_s25 = scalar_lea.vmem %s2057_s30, %s1365_s24  }
 0x269 PF: > { %s2073_s7 = sand.u32 1, %s2123_s21   ;;  %s1379_s9 = sshll.u32 %s2063_s8, 4 }
 0x26a   : > { %s1173_s27 = scalar_lea.vmem %s2046_s15, %s1379_s9 [#allocation9]   ;;  %s1175_s28 = scalar_lea.vmem %s2057_s30, %s1379_s9  }
 0x26b   : > { %p1370_p11 = scmp.le.s32.totalorder %s2073_s7, 0 }
 0x26c   : > { %s1781_s13 = smov (!%p1370_p11), %s1175_s28   ;;  %s1785_s19 = smov (!%p1370_p11), %s1173_s27  }
 0x26d   : > { %1276 = sbr.rel (%p1370_p11) target bundleno = 634 (0x27a), region = 161  ;;  %s1789_s20 = smov (!%p1370_p11), 0  }
 0x26e   : > { %s1793_s12 = smov (!%p1370_p11), 0  }
 0x272 LB: >> { %v1185_v62 = vld [vmem:[%s1787_s19] sm:$0xff]  ;;  %s1187_s21 = sadd.s32 1, %s1791_s20  ;;  %s1179_s12 = sadd.s32 1, %s1795_s12   ;;  %s1795_s12 = sphi %s1793_s12, %s1179_s12   ;;  %s1791_s20 = sphi %s1789_s20, %s1790_s20   ;;  %s1787_s19 = sphi %s1785_s19, %s1192_s19   ;;  %s1783_s13 = sphi %s1781_s13, %s1193_s13  }
 0x273   : >> { %1186 = vst [vmem:[%s1783_s13] sm:$0xff] %v1185_v62  ;;  %p1188_p13 = scmp.ge.s32.totalorder %s1187_s21, %s2073_s7  ;;  %p1178_p0 = scmp.ge.s32.totalorder %s1179_s12, %s2073_s7 }
 0x275   : >> { %s2127_s21 = smov (%p1188_p13, %s1187_s21), 0  ;;  %1181 = sbr.rel (!%p1178_p0) target bundleno = 626 (0x272), region = 167 }
 0x276   : >> { %s1371_s15 = sshll.u32 %s2127_s21, 3  ;;  %s1790_s20 = smov %s2127_s21  }
 0x277   : >> { %s1192_s19 = scalar_lea.vmem %s1173_s27, %s1371_s15 [#allocation9]   ;;  %s1193_s13 = scalar_lea.vmem %s1175_s28, %s1371_s15  }
 0x27a PF: > { %p18_p2 = scmp.ge.s32.totalorder %s1864_s26, 4   ;;  %s2116_s21 = smov %s1755_s22 }
 0x27b   : > { %s2117_s22 = smov %s1759_s23  ;;  %s2118_s23 = smov %s1874_s29 }
 0x27c   : > { %s2119_s24 = smov %s1864_s26  ;;  %20 = sbr.rel (!%p18_p2) target bundleno = 5 (0x5), region = 178 }
 0x281   :  { %1209 = vsyncpa [#allocation3], 1 }
 0x282   :  { %1211 = vsyncpa [#allocation3 + $0x1], 1 }
 0x283   :  { %1212 = vsyncpa [#allocation5], 1 }
 0x284   :  { %1213 = vsyncpa [#allocation8], 1 }

</bundles_post_ra>
